<compile_context>
chip_gen: v5e
topology: v5e:2x2
jax: 0.10.0
libtpu: 0.0.40
codegen_flags: <defaults>
</compile_context>

<pallas_src>
import functools

import jax
import jax.numpy as jnp
from jax import lax
from jax.experimental import pallas as pl
from jax.experimental.pallas import tpu as pltpu


def _round_up(x, m):
    return (x + m - 1) // m * m


def _vmem_capacity_bytes():
    try:
        return int(pltpu.get_tpu_info().vmem_capacity_bytes)
    except Exception:
        return 64 << 20  # conservative (v7x-sized) fallback


# ----------------------------------------------------------------------------
# Kernel: one batch tile of GRUCell + LayerNorm
# ----------------------------------------------------------------------------
def expert_kernel(x_ref, h_ref, wih_ref, whh_ref, bih_ref, bhh_ref,
                  gamma_ref, beta_ref, mask_ref, o_ref,
                  *, h_pad, h_valid, compute_dtype):
    """GRUCell step + LayerNorm for one (TB, :) batch tile.

    x_ref   : (TB, Dp)       input tile (original dtype, e.g. f32)
    h_ref   : (TB, Hp)       previous hidden state tile (original dtype)
    wih_ref : (Dp, 3*Hp)     packed W_ih^T, column blocks [r | z | n]
    whh_ref : (Hp, 3*Hp)     packed W_hh^T, column blocks [r | z | n]
    bih/bhh : (1, 3*Hp) f32  packed biases
    gamma/beta/mask : (1, Hp) f32 rows
    """
    x = x_ref[...].astype(compute_dtype)
    h_prev = h_ref[...].astype(jnp.float32)       # recurrent state kept in f32
    h_c = h_ref[...].astype(compute_dtype)

    # gi = x @ W_ih^T + b_ih ; gh = h @ W_hh^T + b_hh  (torch GRUCell layout).
    # TODO(synk): for a strict full-f32 path at production K, pass
    # precision=lax.Precision.HIGHEST here; default TPU matmul precision is used.
    gi = jnp.dot(x, wih_ref[...], preferred_element_type=jnp.float32) + bih_ref[...]
    gh = jnp.dot(h_c, whh_ref[...], preferred_element_type=jnp.float32) + bhh_ref[...]

    # Gate splits fall on 128-lane tile boundaries (free views).
    r = jax.nn.sigmoid(gi[:, :h_pad] + gh[:, :h_pad])
    z = jax.nn.sigmoid(gi[:, h_pad:2 * h_pad] + gh[:, h_pad:2 * h_pad])
    n = jnp.tanh(gi[:, 2 * h_pad:] + r * gh[:, 2 * h_pad:])
    h_new = (1.0 - z) * n + z * h_prev            # padded hidden lanes stay 0

    # LayerNorm over the valid hidden lanes (PyTorch: biased var, eps=1e-5).
    inv_h = jnp.float32(1.0 / h_valid)
    mu = jnp.sum(h_new, axis=-1, keepdims=True) * inv_h      # pads contribute 0
    if h_valid == h_pad:
        cen = h_new - mu
    else:
        cen = h_new - mu * mask_ref[...]                     # keep pads at 0
    var = jnp.sum(cen * cen, axis=-1, keepdims=True) * inv_h
    y = cen * lax.rsqrt(var + 1e-5) * gamma_ref[...] + beta_ref[...]

    o_ref[...] = y.astype(o_ref.dtype)


# ----------------------------------------------------------------------------
# One-time parameter packing (do this at init, not per step)
# ----------------------------------------------------------------------------
def pack_expert_params(w_ih, w_hh, b_ih, b_hh, gamma, beta,
                       compute_dtype=jnp.bfloat16):
    """Repack torch GRUCell/LayerNorm params for the kernel (call once)."""
    H = gamma.shape[0]
    D = w_ih.shape[1]
    assert w_ih.shape == (3 * H, D) and w_hh.shape == (3 * H, H)
    Dp = _round_up(D, 128)
    Hp = _round_up(H, 128)

    def pack_w(w, k, kp):                       # w: (3H, k), rows [r; z; n]
        out = jnp.zeros((kp, 3 * Hp), compute_dtype)
        for g in range(3):
            blk = w[g * H:(g + 1) * H, :].T.astype(compute_dtype)   # (k, H)
            out = out.at[:k, g * Hp:g * Hp + H].set(blk)
        return out

    def pack_b(b):                              # b: (3H,)
        out = jnp.zeros((1, 3 * Hp), jnp.float32)
        for g in range(3):
            out = out.at[0, g * Hp:g * Hp + H].set(
                b[g * H:(g + 1) * H].astype(jnp.float32))
        return out

    def pack_row(v):
        return jnp.zeros((1, Hp), jnp.float32).at[0, :H].set(v.astype(jnp.float32))

    mask = (lax.broadcasted_iota(jnp.int32, (1, Hp), 1) < H).astype(jnp.float32)

    return dict(
        w_ih=pack_w(w_ih, D, Dp), w_hh=pack_w(w_hh, H, Hp),
        b_ih=pack_b(b_ih), b_hh=pack_b(b_hh),
        gamma=pack_row(gamma), beta=pack_row(beta), mask=mask,
        D=D, H=H, Dp=Dp, Hp=Hp, compute_dtype=compute_dtype,
    )


# ----------------------------------------------------------------------------
# Per-step forward
# ----------------------------------------------------------------------------
def expert_forward(x, h_prev, params, *, out_dtype=None, return_padded=False):
    """x: (B, D), h_prev: (B, H) -> (B, H)   (or (B_pad, Hp) if return_padded)."""
    B, D = x.shape
    H = h_prev.shape[-1]
    assert D == params["D"] and H == params["H"]
    Dp, Hp = params["Dp"], params["Hp"]
    compute_dtype = params["compute_dtype"]
    out_dtype = x.dtype if out_dtype is None else out_dtype

    c_bytes = jnp.dtype(compute_dtype).itemsize
    a_bytes = jnp.dtype(x.dtype).itemsize
    o_bytes = jnp.dtype(out_dtype).itemsize
    row_mult = 16 if c_bytes < 4 else 8          # bf16 packs 16 rows / vreg

    # ---- batch tiling: largest row tile fitting a generation-aware VMEM budget
    capacity = _vmem_capacity_bytes()            # 128 MiB (v5e/v6e) / 64 MiB (v7x)
    budget = (capacity * 3) // 4                 # ~96 MiB / ~48 MiB

    # Conservative: assume double-buffered weights (covers the fallback path).
    w_resident = 2 * ((Dp + Hp) * 3 * Hp * c_bytes + 9 * Hp * 4)

    def vmem_usage(tb):
        act = 2 * tb * (Dp * a_bytes + Hp * a_bytes + Hp * o_bytes)  # dbl-buf I/O
        tmp = tb * 12 * Hp * 4                   # f32 gi/gh/gate/h_new chain
        return act + tmp + w_resident

    TB = min(_round_up(B, row_mult), 4096)
    while TB > row_mult and vmem_usage(TB) > budget:
        TB = max(row_mult, _round_up(TB // 2, row_mult))
    # Keep >= 2 grid steps when possible so "parallel" shards over v7x's 2 TCs.
    if B >= 2 * row_mult:
        TB = min(TB, _round_up((B + 1) // 2, row_mult))

    B_pad = _round_up(B, TB)
    grid = (B_pad // TB,)

    vmem_limit = int(min(max(vmem_usage(TB) + (8 << 20), 16 << 20),
                         capacity - (8 << 20)))

    # ---- per-call activation prep: pad only rows / lane dim when needed
    def pad2(a, rows, cols):
        if a.shape == (rows, cols):
            return a
        return jnp.zeros((rows, cols), a.dtype).at[:a.shape[0], :a.shape[1]].set(a)

    x_p = pad2(x, B_pad, Dp)
    h_p = pad2(h_prev, B_pad, Hp)

    kernel = functools.partial(expert_kernel, h_pad=Hp, h_valid=H,
                               compute_dtype=compute_dtype)

    args = (x_p, h_p, params["w_ih"], params["w_hh"], params["b_ih"],
            params["b_hh"], params["gamma"], params["beta"], params["mask"])

    batch_map = lambda b: (b, 0)
    const_map = lambda b: (0, 0)

    def run(single_buffer_weights):
        if single_buffer_weights:
            resident = lambda shape: pl.BlockSpec(shape, const_map,
                                                  pipeline_mode=pl.Buffered(1))
        else:
            resident = lambda shape: pl.BlockSpec(shape, const_map)
        call = pl.pallas_call(
            kernel,
            out_shape=jax.ShapeDtypeStruct((B_pad, Hp), out_dtype),
            grid_spec=pltpu.PrefetchScalarGridSpec(
                num_scalar_prefetch=0,
                grid=grid,
                in_specs=[
                    pl.BlockSpec((TB, Dp), batch_map),      # x tile
                    pl.BlockSpec((TB, Hp), batch_map),      # h_prev tile
                    resident((Dp, 3 * Hp)),                 # W_ih^T (packed)
                    resident((Hp, 3 * Hp)),                 # W_hh^T (packed)
                    resident((1, 3 * Hp)),                  # b_ih
                    resident((1, 3 * Hp)),                  # b_hh
                    resident((1, Hp)),                      # gamma
                    resident((1, Hp)),                      # beta
                    resident((1, Hp)),                      # valid-lane mask
                ],
                out_specs=pl.BlockSpec((TB, Hp), batch_map),
            ),
            compiler_params=pltpu.CompilerParams(
                dimension_semantics=("parallel",),          # batch tiles -> 2 TCs on v7x
                vmem_limit_bytes=vmem_limit,
            ),
        )
        return call(*args)

    try:
        out = run(single_buffer_weights=True)
    except Exception:
        # pl.Buffered(1) (single-buffered resident weights) not supported on this
        # jax/libtpu build -> fall back to default double buffering (the VMEM
        # budget above already accounts for it).
        out = run(single_buffer_weights=False)

    if return_padded:
        return out                # (B_pad, Hp): caller can fuse the narrowing
    return out[:B, :H]


# ----------------------------------------------------------------------------
# Pure-JAX reference (torch.nn.GRUCell + LayerNorm semantics)
# ----------------------------------------------------------------------------
def reference_forward(x, h_prev, w_ih, w_hh, b_ih, b_hh, gamma, beta):
    H = h_prev.shape[-1]
    gi = x @ w_ih.T + b_ih
    gh = h_prev @ w_hh.T + b_hh
    i_r, i_z, i_n = gi[:, :H], gi[:, H:2 * H], gi[:, 2 * H:]
    h_r, h_z, h_n = gh[:, :H], gh[:, H:2 * H], gh[:, 2 * H:]
    r = jax.nn.sigmoid(i_r + h_r)
    z = jax.nn.sigmoid(i_z + h_z)
    n = jnp.tanh(i_n + r * h_n)
    h_new = (1.0 - z) * n + z * h_prev
    mu = jnp.mean(h_new, axis=-1, keepdims=True)
    var = jnp.mean((h_new - mu) ** 2, axis=-1, keepdims=True)
    return (h_new - mu) / jnp.sqrt(var + 1e-5) * gamma + beta


if __name__ == "__main__":
    batch, input_dim, hidden_dim = 8, 32, 32

    key = jax.random.PRNGKey(0)
    k_x, k_h, k_wih, k_whh, k_bih, k_bhh = jax.random.split(key, 6)

    x = jax.random.normal(k_x, (batch, input_dim), dtype=jnp.float32)
    h_prev = jax.random.normal(k_h, (batch, hidden_dim), dtype=jnp.float32)

    bound = 1.0 / (hidden_dim ** 0.5)
    w_ih = jax.random.uniform(k_wih, (3 * hidden_dim, input_dim),
                              minval=-bound, maxval=bound, dtype=jnp.float32)
    w_hh = jax.random.uniform(k_whh, (3 * hidden_dim, hidden_dim),
                              minval=-bound, maxval=bound, dtype=jnp.float32)
    b_ih = jax.random.uniform(k_bih, (3 * hidden_dim,),
                              minval=-bound, maxval=bound, dtype=jnp.float32)
    b_hh = jax.random.uniform(k_bhh, (3 * hidden_dim,),
                              minval=-bound, maxval=bound, dtype=jnp.float32)
    gamma = jnp.ones((hidden_dim,), dtype=jnp.float32)
    beta = jnp.zeros((hidden_dim,), dtype=jnp.float32)

    ref = reference_forward(x, h_prev, w_ih, w_hh, b_ih, b_hh, gamma, beta)

    # f32 compute path: strict semantic check vs the f32 reference.
    params_f32 = pack_expert_params(w_ih, w_hh, b_ih, b_hh, gamma, beta,
                                    compute_dtype=jnp.float32)
    out_f32 = jax.block_until_ready(expert_forward(x, h_prev, params_f32))
    assert out_f32.shape == (batch, hidden_dim)
    assert jnp.allclose(out_f32, ref, atol=2e-5, rtol=2e-5), "f32 mismatch vs reference"

    # bf16 compute path (MXU-friendly default): loose numerical sanity check.
    params_bf16 = pack_expert_params(w_ih, w_hh, b_ih, b_hh, gamma, beta,
                                     compute_dtype=jnp.bfloat16)
    out_bf16 = jax.block_until_ready(expert_forward(x, h_prev, params_bf16))
    assert out_bf16.shape == (batch, hidden_dim)
    assert jnp.allclose(out_bf16, ref, atol=1e-1, rtol=1e-1), "bf16 mismatch vs reference"

    print("KERNEL_OK")
</pallas_src>

<mosaic_0001>
module attributes {stable_mosaic.version = 11 : i64} {
  func.func @expert_kernel(%arg0: i32, %arg1: memref<8x128xf32, #tpu.memory_space<vmem>>, %arg2: memref<8x128xf32, #tpu.memory_space<vmem>>, %arg3: memref<128x384xf32, #tpu.memory_space<vmem>>, %arg4: memref<128x384xf32, #tpu.memory_space<vmem>>, %arg5: memref<1x384xf32, #tpu.memory_space<vmem>>, %arg6: memref<1x384xf32, #tpu.memory_space<vmem>>, %arg7: memref<1x128xf32, #tpu.memory_space<vmem>>, %arg8: memref<1x128xf32, #tpu.memory_space<vmem>>, %arg9: memref<1x128xf32, #tpu.memory_space<vmem>>, %arg10: memref<8x128xf32, #tpu.memory_space<vmem>>) attributes {dimension_semantics = [#tpu.dimension_semantics<parallel>], iteration_bounds = array<i64: 1>, scalar_prefetch = 0 : i64, scratch_operands = 0 : i64, tpu.core_type = #tpu.core_type<tc>, window_params = [{transform_indices = @transform_0, window_bounds = array<i64: 8, 128>}, {transform_indices = @transform_1, window_bounds = array<i64: 8, 128>}, {pipeline_mode = #tpu.pipeline_mode<synchronous>, transform_indices = @transform_2, window_bounds = array<i64: 128, 384>}, {pipeline_mode = #tpu.pipeline_mode<synchronous>, transform_indices = @transform_3, window_bounds = array<i64: 128, 384>}, {pipeline_mode = #tpu.pipeline_mode<synchronous>, transform_indices = @transform_4, window_bounds = array<i64: 1, 384>}, {pipeline_mode = #tpu.pipeline_mode<synchronous>, transform_indices = @transform_5, window_bounds = array<i64: 1, 384>}, {pipeline_mode = #tpu.pipeline_mode<synchronous>, transform_indices = @transform_6, window_bounds = array<i64: 1, 128>}, {pipeline_mode = #tpu.pipeline_mode<synchronous>, transform_indices = @transform_7, window_bounds = array<i64: 1, 128>}, {pipeline_mode = #tpu.pipeline_mode<synchronous>, transform_indices = @transform_8, window_bounds = array<i64: 1, 128>}, {transform_indices = @transform_9, window_bounds = array<i64: 8, 128>}]} {
    %c0 = arith.constant 0 : index
    %c0_0 = arith.constant 0 : index
    %0 = vector.load %arg1[%c0, %c0_0] : memref<8x128xf32, #tpu.memory_space<vmem>>, vector<8x128xf32>
    %c0_1 = arith.constant 0 : index
    %c0_2 = arith.constant 0 : index
    %1 = vector.load %arg2[%c0_1, %c0_2] : memref<8x128xf32, #tpu.memory_space<vmem>>, vector<8x128xf32>
    %c0_3 = arith.constant 0 : index
    %c0_4 = arith.constant 0 : index
    %2 = vector.load %arg2[%c0_3, %c0_4] : memref<8x128xf32, #tpu.memory_space<vmem>>, vector<8x128xf32>
    %c0_5 = arith.constant 0 : index
    %c0_6 = arith.constant 0 : index
    %3 = vector.load %arg3[%c0_5, %c0_6] : memref<128x384xf32, #tpu.memory_space<vmem>>, vector<128x384xf32>
    %cst = arith.constant dense<0.000000e+00> : vector<8x384xf32>
    %4 = tpu.matmul %0, %3, %cst {dimension_numbers = #tpu.dot_dimension_numbers<[1], [0], [0], [1], [0, 0, 1, 1], [], []>} : vector<8x128xf32>, vector<128x384xf32>, vector<8x384xf32> -> vector<8x384xf32>
    %c0_7 = arith.constant 0 : index
    %c0_8 = arith.constant 0 : index
    %5 = vector.load %arg5[%c0_7, %c0_8] : memref<1x384xf32, #tpu.memory_space<vmem>>, vector<1x384xf32>
    %6 = vector.broadcast %5 : vector<1x384xf32> to vector<8x384xf32>
    %7 = arith.addf %4, %6 : vector<8x384xf32>
    %c0_9 = arith.constant 0 : index
    %c0_10 = arith.constant 0 : index
    %8 = vector.load %arg4[%c0_9, %c0_10] : memref<128x384xf32, #tpu.memory_space<vmem>>, vector<128x384xf32>
    %cst_11 = arith.constant dense<0.000000e+00> : vector<8x384xf32>
    %9 = tpu.matmul %2, %8, %cst_11 {dimension_numbers = #tpu.dot_dimension_numbers<[1], [0], [0], [1], [0, 0, 1, 1], [], []>} : vector<8x128xf32>, vector<128x384xf32>, vector<8x384xf32> -> vector<8x384xf32>
    %c0_12 = arith.constant 0 : index
    %c0_13 = arith.constant 0 : index
    %10 = vector.load %arg6[%c0_12, %c0_13] : memref<1x384xf32, #tpu.memory_space<vmem>>, vector<1x384xf32>
    %11 = vector.broadcast %10 : vector<1x384xf32> to vector<8x384xf32>
    %12 = arith.addf %9, %11 : vector<8x384xf32>
    %13 = vector.extract_strided_slice %7 {offsets = [0, 0], sizes = [8, 128], strides = [1, 1]} : vector<8x384xf32> to vector<8x128xf32>
    %14 = vector.extract_strided_slice %12 {offsets = [0, 0], sizes = [8, 128], strides = [1, 1]} : vector<8x384xf32> to vector<8x128xf32>
    %15 = arith.addf %13, %14 : vector<8x128xf32>
    %16 = arith.negf %15 : vector<8x128xf32>
    %17 = math.exp %16 : vector<8x128xf32>
    %cst_14 = arith.constant 1.000000e+00 : f32
    %18 = vector.broadcast %cst_14 : f32 to vector<8x128xf32>
    %19 = arith.addf %18, %17 : vector<8x128xf32>
    %20 = arith.divf %18, %19 : vector<8x128xf32>
    %21 = vector.extract_strided_slice %7 {offsets = [0, 128], sizes = [8, 128], strides = [1, 1]} : vector<8x384xf32> to vector<8x128xf32>
    %22 = vector.extract_strided_slice %12 {offsets = [0, 128], sizes = [8, 128], strides = [1, 1]} : vector<8x384xf32> to vector<8x128xf32>
    %23 = arith.addf %21, %22 : vector<8x128xf32>
    %24 = arith.negf %23 : vector<8x128xf32>
    %25 = math.exp %24 : vector<8x128xf32>
    %cst_15 = arith.constant 1.000000e+00 : f32
    %26 = vector.broadcast %cst_15 : f32 to vector<8x128xf32>
    %27 = arith.addf %26, %25 : vector<8x128xf32>
    %28 = arith.divf %26, %27 : vector<8x128xf32>
    %29 = vector.extract_strided_slice %7 {offsets = [0, 256], sizes = [8, 128], strides = [1, 1]} : vector<8x384xf32> to vector<8x128xf32>
    %30 = vector.extract_strided_slice %12 {offsets = [0, 256], sizes = [8, 128], strides = [1, 1]} : vector<8x384xf32> to vector<8x128xf32>
    %31 = arith.mulf %20, %30 : vector<8x128xf32>
    %32 = arith.addf %29, %31 : vector<8x128xf32>
    %33 = math.tanh %32 : vector<8x128xf32>
    %cst_16 = arith.constant 1.000000e+00 : f32
    %34 = vector.broadcast %cst_16 : f32 to vector<8x128xf32>
    %35 = arith.subf %34, %28 : vector<8x128xf32>
    %36 = arith.mulf %35, %33 : vector<8x128xf32>
    %37 = arith.mulf %28, %1 : vector<8x128xf32>
    %38 = arith.addf %36, %37 : vector<8x128xf32>
    %cst_17 = arith.constant dense<0.000000e+00> : vector<8xf32>
    %39 = vector.multi_reduction <add>, %38, %cst_17 [1] : vector<8x128xf32> to vector<8xf32>
    %40 = vector.shape_cast %39 : vector<8xf32> to vector<8x1xf32>
    %cst_18 = arith.constant 3.125000e-02 : f32
    %41 = vector.broadcast %cst_18 : f32 to vector<8x1xf32>
    %42 = arith.mulf %40, %41 : vector<8x1xf32>
    %c0_19 = arith.constant 0 : index
    %c0_20 = arith.constant 0 : index
    %43 = vector.load %arg9[%c0_19, %c0_20] : memref<1x128xf32, #tpu.memory_space<vmem>>, vector<1x128xf32>
    %44 = vector.broadcast %42 : vector<8x1xf32> to vector<8x128xf32>
    %45 = vector.broadcast %43 : vector<1x128xf32> to vector<8x128xf32>
    %46 = arith.mulf %44, %45 : vector<8x128xf32>
    %47 = arith.subf %38, %46 : vector<8x128xf32>
    %48 = arith.mulf %47, %47 : vector<8x128xf32>
    %cst_21 = arith.constant dense<0.000000e+00> : vector<8xf32>
    %49 = vector.multi_reduction <add>, %48, %cst_21 [1] : vector<8x128xf32> to vector<8xf32>
    %50 = vector.shape_cast %49 : vector<8xf32> to vector<8x1xf32>
    %cst_22 = arith.constant 3.125000e-02 : f32
    %51 = vector.broadcast %cst_22 : f32 to vector<8x1xf32>
    %52 = arith.mulf %50, %51 : vector<8x1xf32>
    %cst_23 = arith.constant 9.99999974E-6 : f32
    %53 = vector.broadcast %cst_23 : f32 to vector<8x1xf32>
    %54 = arith.addf %52, %53 : vector<8x1xf32>
    %55 = math.rsqrt %54 : vector<8x1xf32>
    %56 = vector.broadcast %55 : vector<8x1xf32> to vector<8x128xf32>
    %57 = arith.mulf %47, %56 : vector<8x128xf32>
    %c0_24 = arith.constant 0 : index
    %c0_25 = arith.constant 0 : index
    %58 = vector.load %arg7[%c0_24, %c0_25] : memref<1x128xf32, #tpu.memory_space<vmem>>, vector<1x128xf32>
    %59 = vector.broadcast %58 : vector<1x128xf32> to vector<8x128xf32>
    %60 = arith.mulf %57, %59 : vector<8x128xf32>
    %c0_26 = arith.constant 0 : index
    %c0_27 = arith.constant 0 : index
    %61 = vector.load %arg8[%c0_26, %c0_27] : memref<1x128xf32, #tpu.memory_space<vmem>>, vector<1x128xf32>
    %62 = vector.broadcast %61 : vector<1x128xf32> to vector<8x128xf32>
    %63 = arith.addf %60, %62 : vector<8x128xf32>
    %c0_28 = arith.constant 0 : index
    %c0_29 = arith.constant 0 : index
    %64 = vector.load %arg10[%c0_28, %c0_29] : memref<8x128xf32, #tpu.memory_space<vmem>>, vector<8x128xf32>
    tpu.vector_store %arg10[%c0_28, %c0_29], %63 {strides = array<i32>} : memref<8x128xf32, #tpu.memory_space<vmem>>, vector<8x128xf32>,
    return
  }
  func.func @transform_0(%arg0: i32) -> (i32, i32) {
    %c0_i32 = arith.constant 0 : i32
    %c0_i32_0 = arith.constant 0 : i32
    return %arg0, %c0_i32 : i32, i32
  }
  func.func @transform_1(%arg0: i32) -> (i32, i32) {
    %c0_i32 = arith.constant 0 : i32
    %c0_i32_0 = arith.constant 0 : i32
    return %arg0, %c0_i32 : i32, i32
  }
  func.func @transform_2(%arg0: i32) -> (i32, i32) {
    %c0_i32 = arith.constant 0 : i32
    %c0_i32_0 = arith.constant 0 : i32
    %c0_i32_1 = arith.constant 0 : i32
    return %c0_i32, %c0_i32_0 : i32, i32
  }
  func.func @transform_3(%arg0: i32) -> (i32, i32) {
    %c0_i32 = arith.constant 0 : i32
    %c0_i32_0 = arith.constant 0 : i32
    %c0_i32_1 = arith.constant 0 : i32
    return %c0_i32, %c0_i32_0 : i32, i32
  }
  func.func @transform_4(%arg0: i32) -> (i32, i32) {
    %c0_i32 = arith.constant 0 : i32
    %c0_i32_0 = arith.constant 0 : i32
    %c0_i32_1 = arith.constant 0 : i32
    return %c0_i32, %c0_i32_0 : i32, i32
  }
  func.func @transform_5(%arg0: i32) -> (i32, i32) {
    %c0_i32 = arith.constant 0 : i32
    %c0_i32_0 = arith.constant 0 : i32
    %c0_i32_1 = arith.constant 0 : i32
    return %c0_i32, %c0_i32_0 : i32, i32
  }
  func.func @transform_6(%arg0: i32) -> (i32, i32) {
    %c0_i32 = arith.constant 0 : i32
    %c0_i32_0 = arith.constant 0 : i32
    %c0_i32_1 = arith.constant 0 : i32
    return %c0_i32, %c0_i32_0 : i32, i32
  }
  func.func @transform_7(%arg0: i32) -> (i32, i32) {
    %c0_i32 = arith.constant 0 : i32
    %c0_i32_0 = arith.constant 0 : i32
    %c0_i32_1 = arith.constant 0 : i32
    return %c0_i32, %c0_i32_0 : i32, i32
  }
  func.func @transform_8(%arg0: i32) -> (i32, i32) {
    %c0_i32 = arith.constant 0 : i32
    %c0_i32_0 = arith.constant 0 : i32
    %c0_i32_1 = arith.constant 0 : i32
    return %c0_i32, %c0_i32_0 : i32, i32
  }
  func.func @transform_9(%arg0: i32) -> (i32, i32) {
    %c0_i32 = arith.constant 0 : i32
    %c0_i32_0 = arith.constant 0 : i32
    return %arg0, %c0_i32 : i32, i32
  }
}

module attributes {stable_mosaic.version = 11 : i64} {
  func.func @expert_kernel(%arg0: i32, %arg1: memref<8x128xf32, #tpu.memory_space<vmem>>, %arg2: memref<8x128xf32, #tpu.memory_space<vmem>>, %arg3: memref<128x384xf32, #tpu.memory_space<vmem>>, %arg4: memref<128x384xf32, #tpu.memory_space<vmem>>, %arg5: memref<1x384xf32, #tpu.memory_space<vmem>>, %arg6: memref<1x384xf32, #tpu.memory_space<vmem>>, %arg7: memref<1x128xf32, #tpu.memory_space<vmem>>, %arg8: memref<1x128xf32, #tpu.memory_space<vmem>>, %arg9: memref<1x128xf32, #tpu.memory_space<vmem>>, %arg10: memref<8x128xf32, #tpu.memory_space<vmem>>) attributes {dimension_semantics = [#tpu.dimension_semantics<parallel>], iteration_bounds = array<i64: 1>, scalar_prefetch = 0 : i64, scratch_operands = 0 : i64, tpu.core_type = #tpu.core_type<tc>, window_params = [{transform_indices = @transform_0, window_bounds = array<i64: 8, 128>}, {transform_indices = @transform_1, window_bounds = array<i64: 8, 128>}, {pipeline_mode = #tpu.pipeline_mode<synchronous>, transform_indices = @transform_2, window_bounds = array<i64: 128, 384>}, {pipeline_mode = #tpu.pipeline_mode<synchronous>, transform_indices = @transform_3, window_bounds = array<i64: 128, 384>}, {pipeline_mode = #tpu.pipeline_mode<synchronous>, transform_indices = @transform_4, window_bounds = array<i64: 1, 384>}, {pipeline_mode = #tpu.pipeline_mode<synchronous>, transform_indices = @transform_5, window_bounds = array<i64: 1, 384>}, {pipeline_mode = #tpu.pipeline_mode<synchronous>, transform_indices = @transform_6, window_bounds = array<i64: 1, 128>}, {pipeline_mode = #tpu.pipeline_mode<synchronous>, transform_indices = @transform_7, window_bounds = array<i64: 1, 128>}, {pipeline_mode = #tpu.pipeline_mode<synchronous>, transform_indices = @transform_8, window_bounds = array<i64: 1, 128>}, {transform_indices = @transform_9, window_bounds = array<i64: 8, 128>}]} {
    %c0 = arith.constant 0 : index
    %c0_0 = arith.constant 0 : index
    %0 = vector.load %arg1[%c0, %c0_0] : memref<8x128xf32, #tpu.memory_space<vmem>>, vector<8x128xf32>
    %c0_1 = arith.constant 0 : index
    %c0_2 = arith.constant 0 : index
    %1 = vector.load %arg2[%c0_1, %c0_2] : memref<8x128xf32, #tpu.memory_space<vmem>>, vector<8x128xf32>
    %c0_3 = arith.constant 0 : index
    %c0_4 = arith.constant 0 : index
    %2 = vector.load %arg2[%c0_3, %c0_4] : memref<8x128xf32, #tpu.memory_space<vmem>>, vector<8x128xf32>
    %c0_5 = arith.constant 0 : index
    %c0_6 = arith.constant 0 : index
    %3 = vector.load %arg3[%c0_5, %c0_6] : memref<128x384xf32, #tpu.memory_space<vmem>>, vector<128x384xf32>
    %cst = arith.constant dense<0.000000e+00> : vector<8x384xf32>
    %4 = tpu.matmul %0, %3, %cst {dimension_numbers = #tpu.dot_dimension_numbers<[1], [0], [0], [1], [0, 0, 1, 1], [], []>} : vector<8x128xf32>, vector<128x384xf32>, vector<8x384xf32> -> vector<8x384xf32>
    %c0_7 = arith.constant 0 : index
    %c0_8 = arith.constant 0 : index
    %5 = vector.load %arg5[%c0_7, %c0_8] : memref<1x384xf32, #tpu.memory_space<vmem>>, vector<1x384xf32>
    %6 = vector.broadcast %5 : vector<1x384xf32> to vector<8x384xf32>
    %7 = arith.addf %4, %6 : vector<8x384xf32>
    %c0_9 = arith.constant 0 : index
    %c0_10 = arith.constant 0 : index
    %8 = vector.load %arg4[%c0_9, %c0_10] : memref<128x384xf32, #tpu.memory_space<vmem>>, vector<128x384xf32>
    %cst_11 = arith.constant dense<0.000000e+00> : vector<8x384xf32>
    %9 = tpu.matmul %2, %8, %cst_11 {dimension_numbers = #tpu.dot_dimension_numbers<[1], [0], [0], [1], [0, 0, 1, 1], [], []>} : vector<8x128xf32>, vector<128x384xf32>, vector<8x384xf32> -> vector<8x384xf32>
    %c0_12 = arith.constant 0 : index
    %c0_13 = arith.constant 0 : index
    %10 = vector.load %arg6[%c0_12, %c0_13] : memref<1x384xf32, #tpu.memory_space<vmem>>, vector<1x384xf32>
    %11 = vector.broadcast %10 : vector<1x384xf32> to vector<8x384xf32>
    %12 = arith.addf %9, %11 : vector<8x384xf32>
    %13 = vector.extract_strided_slice %7 {offsets = [0, 0], sizes = [8, 128], strides = [1, 1]} : vector<8x384xf32> to vector<8x128xf32>
    %14 = vector.extract_strided_slice %12 {offsets = [0, 0], sizes = [8, 128], strides = [1, 1]} : vector<8x384xf32> to vector<8x128xf32>
    %15 = arith.addf %13, %14 : vector<8x128xf32>
    %16 = arith.negf %15 : vector<8x128xf32>
    %17 = math.exp %16 : vector<8x128xf32>
    %cst_14 = arith.constant 1.000000e+00 : f32
    %18 = vector.broadcast %cst_14 : f32 to vector<8x128xf32>
    %19 = arith.addf %18, %17 : vector<8x128xf32>
    %20 = arith.divf %18, %19 : vector<8x128xf32>
    %21 = vector.extract_strided_slice %7 {offsets = [0, 128], sizes = [8, 128], strides = [1, 1]} : vector<8x384xf32> to vector<8x128xf32>
    %22 = vector.extract_strided_slice %12 {offsets = [0, 128], sizes = [8, 128], strides = [1, 1]} : vector<8x384xf32> to vector<8x128xf32>
    %23 = arith.addf %21, %22 : vector<8x128xf32>
    %24 = arith.negf %23 : vector<8x128xf32>
    %25 = math.exp %24 : vector<8x128xf32>
    %cst_15 = arith.constant 1.000000e+00 : f32
    %26 = vector.broadcast %cst_15 : f32 to vector<8x128xf32>
    %27 = arith.addf %26, %25 : vector<8x128xf32>
    %28 = arith.divf %26, %27 : vector<8x128xf32>
    %29 = vector.extract_strided_slice %7 {offsets = [0, 256], sizes = [8, 128], strides = [1, 1]} : vector<8x384xf32> to vector<8x128xf32>
    %30 = vector.extract_strided_slice %12 {offsets = [0, 256], sizes = [8, 128], strides = [1, 1]} : vector<8x384xf32> to vector<8x128xf32>
    %31 = arith.mulf %20, %30 : vector<8x128xf32>
    %32 = arith.addf %29, %31 : vector<8x128xf32>
    %33 = math.tanh %32 : vector<8x128xf32>
    %cst_16 = arith.constant 1.000000e+00 : f32
    %34 = vector.broadcast %cst_16 : f32 to vector<8x128xf32>
    %35 = arith.subf %34, %28 : vector<8x128xf32>
    %36 = arith.mulf %35, %33 : vector<8x128xf32>
    %37 = arith.mulf %28, %1 : vector<8x128xf32>
    %38 = arith.addf %36, %37 : vector<8x128xf32>
    %cst_17 = arith.constant dense<0.000000e+00> : vector<8xf32>
    %39 = vector.multi_reduction <add>, %38, %cst_17 [1] : vector<8x128xf32> to vector<8xf32>
    %40 = vector.shape_cast %39 : vector<8xf32> to vector<8x1xf32>
    %cst_18 = arith.constant 3.125000e-02 : f32
    %41 = vector.broadcast %cst_18 : f32 to vector<8x1xf32>
    %42 = arith.mulf %40, %41 : vector<8x1xf32>
    %c0_19 = arith.constant 0 : index
    %c0_20 = arith.constant 0 : index
    %43 = vector.load %arg9[%c0_19, %c0_20] : memref<1x128xf32, #tpu.memory_space<vmem>>, vector<1x128xf32>
    %44 = vector.broadcast %42 : vector<8x1xf32> to vector<8x128xf32>
    %45 = vector.broadcast %43 : vector<1x128xf32> to vector<8x128xf32>
    %46 = arith.mulf %44, %45 : vector<8x128xf32>
    %47 = arith.subf %38, %46 : vector<8x128xf32>
    %48 = arith.mulf %47, %47 : vector<8x128xf32>
    %cst_21 = arith.constant dense<0.000000e+00> : vector<8xf32>
    %49 = vector.multi_reduction <add>, %48, %cst_21 [1] : vector<8x128xf32> to vector<8xf32>
    %50 = vector.shape_cast %49 : vector<8xf32> to vector<8x1xf32>
    %cst_22 = arith.constant 3.125000e-02 : f32
    %51 = vector.broadcast %cst_22 : f32 to vector<8x1xf32>
    %52 = arith.mulf %50, %51 : vector<8x1xf32>
    %cst_23 = arith.constant 9.99999974E-6 : f32
    %53 = vector.broadcast %cst_23 : f32 to vector<8x1xf32>
    %54 = arith.addf %52, %53 : vector<8x1xf32>
    %55 = math.rsqrt %54 : vector<8x1xf32>
    %56 = vector.broadcast %55 : vector<8x1xf32> to vector<8x128xf32>
    %57 = arith.mulf %47, %56 : vector<8x128xf32>
    %c0_24 = arith.constant 0 : index
    %c0_25 = arith.constant 0 : index
    %58 = vector.load %arg7[%c0_24, %c0_25] : memref<1x128xf32, #tpu.memory_space<vmem>>, vector<1x128xf32>
    %59 = vector.broadcast %58 : vector<1x128xf32> to vector<8x128xf32>
    %60 = arith.mulf %57, %59 : vector<8x128xf32>
    %c0_26 = arith.constant 0 : index
    %c0_27 = arith.constant 0 : index
    %61 = vector.load %arg8[%c0_26, %c0_27] : memref<1x128xf32, #tpu.memory_space<vmem>>, vector<1x128xf32>
    %62 = vector.broadcast %61 : vector<1x128xf32> to vector<8x128xf32>
    %63 = arith.addf %60, %62 : vector<8x128xf32>
    %c0_28 = arith.constant 0 : index
    %c0_29 = arith.constant 0 : index
    %64 = vector.load %arg10[%c0_28, %c0_29] : memref<8x128xf32, #tpu.memory_space<vmem>>, vector<8x128xf32>
    tpu.vector_store %arg10[%c0_28, %c0_29], %63 {strides = array<i32>} : memref<8x128xf32, #tpu.memory_space<vmem>>, vector<8x128xf32>,
    return
  }
  func.func @transform_0(%arg0: i32) -> (i32, i32) {
    %c0_i32 = arith.constant 0 : i32
    %c0_i32_0 = arith.constant 0 : i32
    return %arg0, %c0_i32 : i32, i32
  }
  func.func @transform_1(%arg0: i32) -> (i32, i32) {
    %c0_i32 = arith.constant 0 : i32
    %c0_i32_0 = arith.constant 0 : i32
    return %arg0, %c0_i32 : i32, i32
  }
  func.func @transform_2(%arg0: i32) -> (i32, i32) {
    %c0_i32 = arith.constant 0 : i32
    %c0_i32_0 = arith.constant 0 : i32
    %c0_i32_1 = arith.constant 0 : i32
    return %c0_i32, %c0_i32_0 : i32, i32
  }
  func.func @transform_3(%arg0: i32) -> (i32, i32) {
    %c0_i32 = arith.constant 0 : i32
    %c0_i32_0 = arith.constant 0 : i32
    %c0_i32_1 = arith.constant 0 : i32
    return %c0_i32, %c0_i32_0 : i32, i32
  }
  func.func @transform_4(%arg0: i32) -> (i32, i32) {
    %c0_i32 = arith.constant 0 : i32
    %c0_i32_0 = arith.constant 0 : i32
    %c0_i32_1 = arith.constant 0 : i32
    return %c0_i32, %c0_i32_0 : i32, i32
  }
  func.func @transform_5(%arg0: i32) -> (i32, i32) {
    %c0_i32 = arith.constant 0 : i32
    %c0_i32_0 = arith.constant 0 : i32
    %c0_i32_1 = arith.constant 0 : i32
    return %c0_i32, %c0_i32_0 : i32, i32
  }
  func.func @transform_6(%arg0: i32) -> (i32, i32) {
    %c0_i32 = arith.constant 0 : i32
    %c0_i32_0 = arith.constant 0 : i32
    %c0_i32_1 = arith.constant 0 : i32
    return %c0_i32, %c0_i32_0 : i32, i32
  }
  func.func @transform_7(%arg0: i32) -> (i32, i32) {
    %c0_i32 = arith.constant 0 : i32
    %c0_i32_0 = arith.constant 0 : i32
    %c0_i32_1 = arith.constant 0 : i32
    return %c0_i32, %c0_i32_0 : i32, i32
  }
  func.func @transform_8(%arg0: i32) -> (i32, i32) {
    %c0_i32 = arith.constant 0 : i32
    %c0_i32_0 = arith.constant 0 : i32
    %c0_i32_1 = arith.constant 0 : i32
    return %c0_i32, %c0_i32_0 : i32, i32
  }
  func.func @transform_9(%arg0: i32) -> (i32, i32) {
    %c0_i32 = arith.constant 0 : i32
    %c0_i32_0 = arith.constant 0 : i32
    return %arg0, %c0_i32 : i32, i32
  }
}

</mosaic_0001>

<bundles_post_ra>
// kernel: tpu_custom_call.1
= control target key start
LH: loop header
LB: loop body
LE: loop exit
PB: predicated region body
PF: predicated region fallthrough
CT: control target
= control target key end

     0   :  { %14 = vsyncpa [#allocation3], 0  ;;  %s717_s0 = inlined_call_operand.hbm [shape: f32[8,128], index: 0, kind: input, shape index: {}]   ;;  %s718_s1 = inlined_call_operand.hbm [shape: f32[8,128], index: 1, kind: input, shape index: {}]   ;;  %s719_s2 = inlined_call_operand.hbm [shape: f32[128,384], index: 2, kind: input, shape index: {}]   ;;  %s720_s3 = inlined_call_operand.hbm [shape: f32[128,384], index: 3, kind: input, shape index: {}]   ;;  %s721_s4 = inlined_call_operand.vmem [shape: f32[1,384], index: 4, kind: input, shape index: {}]   ;;  %s722_s5 = inlined_call_operand.hbm [shape: f32[1,384], index: 5, kind: input, shape index: {}]   ;;  %s723_s6 = inlined_call_operand.vmem [shape: f32[1,128], index: 6, kind: input, shape index: {}]   ;;  %s724_s7 = inlined_call_operand.vmem [shape: f32[1,128], index: 7, kind: input, shape index: {}]   ;;  %s725_s8 = inlined_call_operand.vmem [shape: f32[1,128], index: 8, kind: input, shape index: {}]   ;;  %s726_s9 = inlined_call_operand.hbm [shape: f32[8,128], index: 9, kind: output, shape index: {}]  }
   0x1   :  { %15 = vsyncpa [#allocation6], 0 }
   0x2   :  { %16 = vsyncpa [#allocation9], 0  ;;  %s34_s11 = sshll.u32 %s718_s1, 4  ;;  %s35_s11 = int_to_ptr.hbm [resolvable:$true] %s34_s11 }
   0x3   :  { %17 = vsyncpa [#allocation4], 0  ;;  %s618_s12 = smov [#allocation5]   ;;  %s57_s16 = sshll.u32 %s720_s3, 4  ;;  %s58_s16 = int_to_ptr.hbm [resolvable:$true] %s57_s16 }
   0x4   :  { %s36_s13 = sshll.u32 %s618_s12, 4  ;;  %s619_s17 = smov [#allocation8]   ;;  %s37_s13 = int_to_ptr.vmem [resolvable:$true] %s36_s13 }
   0x5   :  { %39 = dma.hbm_to_vmem [thread:$0]  %s35_s11, 128, %s37_s13, [#allocation6]  }
   0x6   :  { %s59_s18 = sshll.u32 %s619_s17, 4  ;;  %s23_s21 = sshll.u32 %s717_s0, 4  ;;  %s60_s18 = int_to_ptr.vmem [resolvable:$true] %s59_s18  ;;  %s24_s21 = int_to_ptr.hbm [resolvable:$true] %s23_s21 }
   0x7   :  { %s620_s1 = smov 384   ;;  %s621_s22 = smov 24  }
   0x8   :  { %65 = dma.hbm_to_vmem [thread:$0]  %s58_s16, 6144, %s60_s18, [#allocation9], %s620_s1, %s620_s1, %s621_s22  }
   0x9   :  { %s44_s25 = sshll.u32 %s719_s2, 4  ;;  %s622_s26 = smov [#allocation2]   ;;  %s45_s25 = int_to_ptr.hbm [resolvable:$true] %s44_s25 }
   0xa   :  { %s25_s27 = sshll.u32 %s622_s26, 4  ;;  %s623_s3 = smov [#allocation7]   ;;  %s26_s27 = int_to_ptr.vmem [resolvable:$true] %s25_s27 }
   0xb   :  { %28 = dma.hbm_to_vmem [thread:$0]  %s24_s21, 128, %s26_s27, [#allocation3]  }
   0xc   :  { %s46_s28 = sshll.u32 %s623_s3, 4  ;;  %s73_s0 = sshll.u32 %s722_s5, 4  ;;  %s47_s28 = int_to_ptr.vmem [resolvable:$true] %s46_s28  ;;  %s74_s0 = int_to_ptr.hbm [resolvable:$true] %s73_s0 }
   0xd   :  { %52 = dma.hbm_to_vmem [thread:$0]  %s45_s25, 6144, %s47_s28, [#allocation6], %s620_s1, %s620_s1, %s621_s22  }
   0xe   :  { %s624_s10 = smov [#allocation10]  }
   0xf   :  { %s75_s11 = sshll.u32 %s624_s10, 4  ;;  %s76_s11 = int_to_ptr.vmem [resolvable:$true] %s75_s11 }
  0x10   :  { %78 = dma.hbm_to_vmem [thread:$0]  %s74_s0, 48, %s76_s11, [#allocation9]  }
  0x11   :  { %610 = dma.done.wait [#allocation3], 128  }
  0x12   :  { %611 = vsyncadd [#allocation3], 4294967168 }
  0x13   :  { %612 = dma.done.wait [#allocation6], 6272  }
  0x14   :  { %613 = vsyncadd [#allocation6], 4294961024 }
  0x15   :  { %614 = dma.done.wait [#allocation9], 6192  }
  0x16   :  { %615 = vsyncadd [#allocation9], 4294961104  ;;  %v152_v0 = vld [vmem:[#allocation7 + $0x168] sm:$0xff]  ;;  %v149_v1 = vld [vmem:[#allocation7 + $0x150] sm:$0xff]  ;;  %s625_s16 = smov [#allocation11]   ;;  %s429_s20 = sshll.u32 %s726_s9, 4  ;;  %s430_s20 = int_to_ptr.hbm [resolvable:$true] %s429_s20 }
  0x17   :  { %v268_v2 = vld [vmem:[#allocation8 + $0x168] sm:$0xff]  ;;  %163 = vmatpush.msra.mxu0 %v152_v0  ;;  %v265_v3 = vld [vmem:[#allocation8 + $0x150] sm:$0xff]  ;;  %v146_v4 = vld [vmem:[#allocation7 + $0x138] sm:$0xff]  ;;  %s427_s17 = sshll.u32 %s625_s16, 4  ;;  %s428_s17 = int_to_ptr.vmem [resolvable:$true] %s427_s17 }
  0x18   :  { %279 = vmatpush.msra.mxu3 %v268_v2  ;;  %v262_v5 = vld [vmem:[#allocation8 + $0x138] sm:$0xff]  ;;  %v153_v6 = vld [vmem:[#allocation7 + $0x170] sm:$0xff]  ;;  %v143_v8 = vld [vmem:[#allocation7 + $0x120] sm:$0xff] }
  0x19   :  { %164 = vmatpush.msra.mxu0 %v149_v1  ;;  %v150_v7 = vld [vmem:[#allocation7 + $0x158] sm:$0xff]  ;;  %183 = vmatpush.msra.mxu1 %v153_v6  ;;  %v259_v9 = vld [vmem:[#allocation8 + $0x120] sm:$0xff]  ;;  %v140_v11 = vld [vmem:[#allocation7 + $0x108] sm:$0xff] }
  0x1a   :  { %280 = vmatpush.msra.mxu3 %v265_v3  ;;  %v147_v10 = vld [vmem:[#allocation7 + $0x140] sm:$0xff]  ;;  %v256_v12 = vld [vmem:[#allocation8 + $0x108] sm:$0xff]  ;;  %v137_v14 = vld [vmem:[#allocation7 + $0xf0] sm:$0xff] }
  0x1b   :  { %165 = vmatpush.msra.mxu0 %v146_v4  ;;  %184 = vmatpush.msra.mxu1 %v150_v7  ;;  %v144_v13 = vld [vmem:[#allocation7 + $0x128] sm:$0xff]  ;;  %v253_v15 = vld [vmem:[#allocation8 + $0xf0] sm:$0xff]  ;;  %v134_v17 = vld [vmem:[#allocation7 + $0xd8] sm:$0xff] }
  0x1c   :  { %281 = vmatpush.msra.mxu3 %v262_v5  ;;  %v141_v16 = vld [vmem:[#allocation7 + $0x110] sm:$0xff]  ;;  %v250_v18 = vld [vmem:[#allocation8 + $0xd8] sm:$0xff]  ;;  %v131_v20 = vld [vmem:[#allocation7 + $0xc0] sm:$0xff] }
  0x1d   :  { %166 = vmatpush.msra.mxu0 %v143_v8  ;;  %185 = vmatpush.msra.mxu1 %v147_v10  ;;  %v138_v19 = vld [vmem:[#allocation7 + $0xf8] sm:$0xff]  ;;  %v247_v21 = vld [vmem:[#allocation8 + $0xc0] sm:$0xff]  ;;  %v128_v23 = vld [vmem:[#allocation7 + $0xa8] sm:$0xff] }
  0x1e   :  { %282 = vmatpush.msra.mxu3 %v259_v9  ;;  %v135_v22 = vld [vmem:[#allocation7 + $0xe0] sm:$0xff]  ;;  %v244_v24 = vld [vmem:[#allocation8 + $0xa8] sm:$0xff]  ;;  %v125_v26 = vld [vmem:[#allocation7 + $0x90] sm:$0xff] }
  0x1f   :  { %167 = vmatpush.msra.mxu0 %v140_v11  ;;  %186 = vmatpush.msra.mxu1 %v144_v13  ;;  %v132_v25 = vld [vmem:[#allocation7 + $0xc8] sm:$0xff]  ;;  %v241_v27 = vld [vmem:[#allocation8 + $0x90] sm:$0xff]  ;;  %v154_v28 = vld [vmem:[#allocation7 + $0x178] sm:$0xff] }
  0x20   :  { %283 = vmatpush.msra.mxu3 %v256_v12  ;;  %v129_v29 = vld [vmem:[#allocation7 + $0xb0] sm:$0xff]  ;;  %v151_v30 = vld [vmem:[#allocation7 + $0x160] sm:$0xff]  ;;  %v122_v31 = vld [vmem:[#allocation7 + $0x78] sm:$0xff]  ;;  %203 = vmatpush.msra.mxu2 %v154_v28 }
  0x21   :  { %168 = vmatpush.msra.mxu0 %v137_v14  ;;  %187 = vmatpush.msra.mxu1 %v141_v16  ;;  %v238_v32 = vld [vmem:[#allocation8 + $0x78] sm:$0xff]  ;;  %v148_v34 = vld [vmem:[#allocation7 + $0x148] sm:$0xff]  ;;  %v119_v35 = vld [vmem:[#allocation7 + $0x60] sm:$0xff] }
  0x22   :  { %284 = vmatpush.msra.mxu3 %v253_v15  ;;  %v126_v33 = vld [vmem:[#allocation7 + $0x98] sm:$0xff]  ;;  %v235_v36 = vld [vmem:[#allocation8 + $0x60] sm:$0xff]  ;;  %204 = vmatpush.msra.mxu2 %v151_v30  ;;  %v145_v38 = vld [vmem:[#allocation7 + $0x130] sm:$0xff] }
  0x23   :  { %169 = vmatpush.msra.mxu0 %v134_v17  ;;  %188 = vmatpush.msra.mxu1 %v138_v19  ;;  %v123_v37 = vld [vmem:[#allocation7 + $0x80] sm:$0xff]  ;;  %v116_v39 = vld [vmem:[#allocation7 + $0x48] sm:$0xff]  ;;  %v142_v42 = vld [vmem:[#allocation7 + $0x118] sm:$0xff] }
  0x24   :  { %285 = vmatpush.msra.mxu3 %v250_v18  ;;  %v232_v40 = vld [vmem:[#allocation8 + $0x48] sm:$0xff]  ;;  %205 = vmatpush.msra.mxu2 %v148_v34  ;;  %v113_v43 = vld [vmem:[#allocation7 + $0x30] sm:$0xff]  ;;  %v139_v46 = vld [vmem:[#allocation7 + $0x100] sm:$0xff] }
  0x25   :  { %170 = vmatpush.msra.mxu0 %v131_v20  ;;  %189 = vmatpush.msra.mxu1 %v135_v22  ;;  %v120_v41 = vld [vmem:[#allocation7 + $0x68] sm:$0xff]  ;;  %v229_v44 = vld [vmem:[#allocation8 + $0x30] sm:$0xff]  ;;  %v110_v47 = vld [vmem:[#allocation7 + $0x18] sm:$0xff] }
  0x26   :  { %286 = vmatpush.msra.mxu3 %v247_v21  ;;  %206 = vmatpush.msra.mxu2 %v145_v38  ;;  %v117_v45 = vld [vmem:[#allocation7 + $0x50] sm:$0xff]  ;;  %v226_v48 = vld [vmem:[#allocation8 + $0x18] sm:$0xff]  ;;  %v136_v50 = vld [vmem:[#allocation7 + $0xe8] sm:$0xff] }
  0x27   :  { %171 = vmatpush.msra.mxu0 %v128_v23  ;;  %190 = vmatpush.msra.mxu1 %v132_v25  ;;  %v114_v49 = vld [vmem:[#allocation7 + $0x38] sm:$0xff]  ;;  %v107_v51 = vld [vmem:[#allocation7] sm:$0xff]  ;;  %v269_v53 = vld [vmem:[#allocation8 + $0x170] sm:$0xff] }
  0x28   :  { %287 = vmatpush.msra.mxu3 %v244_v24  ;;  %207 = vmatpush.msra.mxu2 %v142_v42  ;;  %v223_v52 = vld [vmem:[#allocation8] sm:$0xff]  ;;  %v691_v54 = vld [vmem:[#allocation5] sm:$0xff]  ;;  %v693_v56 = vld [vmem:[#allocation2] sm:$0xff] }
  0x29   :  { %172 = vmatpush.msra.mxu0 %v125_v26  ;;  %191 = vmatpush.msra.mxu1 %v129_v29  ;;  %v111_v55 = vld [vmem:[#allocation7 + $0x20] sm:$0xff]  ;;  %v266_v57 = vld [vmem:[#allocation8 + $0x158] sm:$0xff]  ;;  %v133_v58 = vld [vmem:[#allocation7 + $0xd0] sm:$0xff] }
  0x2a   :  { %288 = vmatpush.msra.mxu3 %v241_v27  ;;  %208 = vmatpush.msra.mxu2 %v139_v46  ;;  %v263_v59 = vld [vmem:[#allocation8 + $0x140] sm:$0xff]  ;;  %v108_v60 = vld [vmem:[#allocation7 + $0x8] sm:$0xff]  ;;  %v270_v61 = vld [vmem:[#allocation8 + $0x178] sm:$0xff] }
  0x2b   :  { %173 = vmatpush.msra.mxu0 %v122_v31  ;;  %192 = vmatpush.msra.mxu1 %v126_v33  ;;  %v130_v62 = vld [vmem:[#allocation7 + $0xb8] sm:$0xff]  ;;  %v260_v63 = vld [vmem:[#allocation8 + $0x128] sm:$0xff]  ;;  %v267_v0 = vld [vmem:[#allocation8 + $0x160] sm:$0xff] }
  0x2c   :  { %289 = vmatpush.msra.mxu3 %v238_v32  ;;  %209 = vmatpush.msra.mxu2 %v136_v50  ;;  %v127_v1 = vld [vmem:[#allocation7 + $0xa0] sm:$0xff]  ;;  %v257_v2 = vld [vmem:[#allocation8 + $0x110] sm:$0xff]  ;;  %v264_v3 = vld [vmem:[#allocation8 + $0x148] sm:$0xff] }
  0x2d   :  { %174 = vmatpush.msra.mxu0 %v119_v35  ;;  %193 = vmatpush.msra.mxu1 %v123_v37  ;;  %v124_v4 = vld [vmem:[#allocation7 + $0x88] sm:$0xff]  ;;  %v254_v5 = vld [vmem:[#allocation8 + $0xf8] sm:$0xff]  ;;  %v261_v6 = vld [vmem:[#allocation8 + $0x130] sm:$0xff] }
  0x2e   :  { %290 = vmatpush.msra.mxu3 %v235_v36  ;;  %210 = vmatpush.msra.mxu2 %v133_v58  ;;  %v121_v7 = vld [vmem:[#allocation7 + $0x70] sm:$0xff]  ;;  %v251_v8 = vld [vmem:[#allocation8 + $0xe0] sm:$0xff]  ;;  %v258_v9 = vld [vmem:[#allocation8 + $0x118] sm:$0xff] }
  0x2f   :  { %175 = vmatpush.msra.mxu0 %v116_v39  ;;  %194 = vmatpush.msra.mxu1 %v120_v41  ;;  %v118_v10 = vld [vmem:[#allocation7 + $0x58] sm:$0xff]  ;;  %v248_v11 = vld [vmem:[#allocation8 + $0xc8] sm:$0xff]  ;;  %v255_v12 = vld [vmem:[#allocation8 + $0x100] sm:$0xff] }
  0x30   :  { %291 = vmatpush.msra.mxu3 %v232_v40  ;;  %211 = vmatpush.msra.mxu2 %v130_v62  ;;  %v115_v13 = vld [vmem:[#allocation7 + $0x40] sm:$0xff]  ;;  %v245_v14 = vld [vmem:[#allocation8 + $0xb0] sm:$0xff]  ;;  %v252_v15 = vld [vmem:[#allocation8 + $0xe8] sm:$0xff] }
  0x31   :  { %176 = vmatpush.msra.mxu0 %v113_v43  ;;  %195 = vmatpush.msra.mxu1 %v117_v45  ;;  %v112_v16 = vld [vmem:[#allocation7 + $0x28] sm:$0xff]  ;;  %v242_v17 = vld [vmem:[#allocation8 + $0x98] sm:$0xff]  ;;  %v249_v18 = vld [vmem:[#allocation8 + $0xd0] sm:$0xff] }
  0x32   :  { %292 = vmatpush.msra.mxu3 %v229_v44  ;;  %212 = vmatpush.msra.mxu2 %v127_v1  ;;  %v109_v19 = vld [vmem:[#allocation7 + $0x10] sm:$0xff]  ;;  %v239_v20 = vld [vmem:[#allocation8 + $0x80] sm:$0xff]  ;;  %v246_v21 = vld [vmem:[#allocation8 + $0xb8] sm:$0xff] }
  0x33   :  { %177 = vmatpush.msra.mxu0 %v110_v47  ;;  %196 = vmatpush.msra.mxu1 %v114_v49  ;;  %v236_v22 = vld [vmem:[#allocation8 + $0x68] sm:$0xff]  ;;  %v243_v23 = vld [vmem:[#allocation8 + $0xa0] sm:$0xff]  ;;  %v233_v24 = vld [vmem:[#allocation8 + $0x50] sm:$0xff] }
  0x34   :  { %293 = vmatpush.msra.mxu3 %v226_v48  ;;  %213 = vmatpush.msra.mxu2 %v124_v4  ;;  %v240_v25 = vld [vmem:[#allocation8 + $0x88] sm:$0xff]  ;;  %v230_v26 = vld [vmem:[#allocation8 + $0x38] sm:$0xff]  ;;  %v237_v27 = vld [vmem:[#allocation8 + $0x70] sm:$0xff] }
  0x35   :  { %178 = vmatpush.msra.mxu0 %v107_v51  ;;  %197 = vmatpush.msra.mxu1 %v111_v55  ;;  %v227_v28 = vld [vmem:[#allocation8 + $0x20] sm:$0xff]  ;;  %v234_v29 = vld [vmem:[#allocation8 + $0x58] sm:$0xff]  ;;  %v224_v30 = vld [vmem:[#allocation8 + $0x8] sm:$0xff] }
  0x36   :  { %294 = vmatpush.msra.mxu3 %v223_v52  ;;  %179 = vmatmul.f32.vlgmr.msra.gmra.mxu0 %v693_v56  ;;  %v231_v31 = vld [vmem:[#allocation8 + $0x40] sm:$0xff]  ;;  %v228_v32 = vld [vmem:[#allocation8 + $0x28] sm:$0xff]  ;;  %v225_v33 = vld [vmem:[#allocation8 + $0x10] sm:$0xff] }
  0x37   :  { %299 = vmatpush.msrb.mxu0 %v269_v53  ;;  %295 = vmatmul.f32.vlgmr.msra.gmra.mxu3 %v691_v54  ;;  %v155_v34 = vld [vmem:[%s721_s4] sm:$0x7]  ;;  %v271_v35 = vld [vmem:[#allocation10] sm:$0x7] }
  0x38   :  { %198 = vmatpush.msra.mxu1 %v108_v60  ;;  %214 = vmatpush.msra.mxu2 %v121_v7  ;;  %v157_v36 = vperm.slane %v155_v34, 0  ;;  %v273_v38 = vperm.slane %v271_v35, 0  ;;  %v158_v46 = vperm.slane %v155_v34, 1  ;;  %v274_v49 = vperm.slane %v271_v35, 1 }
  0x39   :  { %300 = vmatpush.msrb.mxu0 %v266_v57  ;;  %199 = vmatmul.f32.vlgmr.msra.gmra.mxu1 %v693_v56  ;;  %v275_v62 = vperm.slane %v271_v35, 2 }
  0x3a   :  { %319 = vmatpush.msrb.mxu1 %v270_v61  ;;  %215 = vmatpush.msra.mxu2 %v118_v10 }
  0x3b   :  { %301 = vmatpush.msrb.mxu0 %v263_v59 }
  0x3c   :  { %320 = vmatpush.msrb.mxu1 %v267_v0  ;;  %216 = vmatpush.msra.mxu2 %v115_v13 }
  0x3d   :  { %302 = vmatpush.msrb.mxu0 %v260_v63 }
  0x3e   :  { %321 = vmatpush.msrb.mxu1 %v264_v3  ;;  %217 = vmatpush.msra.mxu2 %v112_v16 }
  0x3f   :  { %303 = vmatpush.msrb.mxu0 %v257_v2 }
  0x40   :  { %322 = vmatpush.msrb.mxu1 %v261_v6  ;;  %218 = vmatpush.msra.mxu2 %v109_v19 }
  0x41   :  { %304 = vmatpush.msrb.mxu0 %v254_v5  ;;  %219 = vmatmul.f32.vlgmr.msra.gmra.mxu2 %v693_v56  ;;  %v159_v5 = vperm.slane %v155_v34, 2 }
  0x42   :  { %323 = vmatpush.msrb.mxu1 %v258_v9 }
  0x43   :  { %305 = vmatpush.msrb.mxu0 %v251_v8 }
  0x44   :  { %324 = vmatpush.msrb.mxu1 %v255_v12 }
  0x45   :  { %306 = vmatpush.msrb.mxu0 %v248_v11 }
  0x46   :  { %325 = vmatpush.msrb.mxu1 %v252_v15 }
  0x47   :  { %307 = vmatpush.msrb.mxu0 %v245_v14 }
  0x48   :  { %326 = vmatpush.msrb.mxu1 %v249_v18 }
  0x49   :  { %308 = vmatpush.msrb.mxu0 %v242_v17 }
  0x4a   :  { %327 = vmatpush.msrb.mxu1 %v246_v21 }
  0x4b   :  { %309 = vmatpush.msrb.mxu0 %v239_v20 }
  0x4c   :  { %328 = vmatpush.msrb.mxu1 %v243_v23 }
  0x4d   :  { %310 = vmatpush.msrb.mxu0 %v236_v22 }
  0x4e   :  { %329 = vmatpush.msrb.mxu1 %v240_v25 }
  0x4f   :  { %311 = vmatpush.msrb.mxu0 %v233_v24 }
  0x50   :  { %330 = vmatpush.msrb.mxu1 %v237_v27 }
  0x51   :  { %312 = vmatpush.msrb.mxu0 %v230_v26  ;;  %v451_v26 = vld [vmem:[%s725_s8] ss:$0 sm:$0xff] }
  0x52   :  { %331 = vmatpush.msrb.mxu1 %v234_v29 }
  0x53   :  { %313 = vmatpush.msrb.mxu0 %v227_v28 }
  0x54   :  { %332 = vmatpush.msrb.mxu1 %v231_v31 }
  0x55   :  { %314 = vmatpush.msrb.mxu0 %v224_v30 }
  0x56   :  { %315 = vmatmul.f32.vlgmr.msrb.gmra.mxu0 %v691_v54  ;;  %333 = vmatpush.msrb.mxu1 %v228_v32 }
  0x58   :  { %334 = vmatpush.msrb.mxu1 %v225_v33 }
  0x59   :  { %335 = vmatmul.f32.vlgmr.msrb.gmra.mxu1 %v691_v54 }
  0xb3   :  { %v180_v37 = vpop.f32.mrf.mxu0 }
  0xb4   :  { %v181_v39 = vadd.f32 %v180_v37, %v157_v36 }
  0xb6   :  { %v200_v47 = vpop.f32.mrf.mxu1 }
  0xb7   :  { %v201_v51 = vadd.f32 %v200_v47, %v158_v46 }
  0xba   :  { %v296_v40 = vpop.f32.mrf.mxu3 }
  0xbb   :  { %v297_v41 = vadd.f32 %v296_v40, %v273_v38  ;;  %v452_v40 = vld [vmem:[%s723_s6] ss:$0 sm:$0xff] }
  0xbd   :  { %v339_v42 = vadd.f32 %v297_v41, %v181_v39 }
  0xbf   :  { %v441_v43 = vmul.f32 -1.442695, %v339_v42 }
  0xc1   :  { %454 = vpow2.f32 %v441_v43  ;;  %v453_v43 = vld [vmem:[%s724_s7] ss:$0 sm:$0xff] }
  0xc4   :  { %v220_v7 = vpop.f32.mrf.mxu2 }
  0xc5   :  { %v221_v9 = vadd.f32 %v220_v7, %v159_v5 }
  0xc7   :  { %v455_v44 = vpop.eup %454 }
  0xc8   :  { %v343_v45 = vadd.f32 1.0, %v455_v44 }
  0xca   :  { %456 = vrcp.f32 %v343_v45  ;;  %vm349_vm0 = vweird.f32 %v343_v45  ;;  %v355_v59 = vand.u32 2147483648, %v343_v45  ;;  %v353_v61 = vand.u32 2147483647, %v343_v45 }
  0xcc   :  { %v356_v1 = vor.u32 1.1754944e-38, %v355_v59  ;;  %vm354_vm3 = vcmp.eq.f32.partialorder %v353_v61, 8.507059e+37 }
  0xd0   :  { %v457_v48 = vpop.eup %456 }
  0xd1   :  { %v345_v50 = vmul.f32 %v457_v48, %v343_v45  ;;  %vm350_vm1 = vweird.f32 %v457_v48 }
  0xd2   :  { %vm351_vm2 = vmor %vm349_vm0, %vm350_vm1 }
  0xd3   :  { %v316_v52 = vpop.f32.mrf.mxu0  ;;  %v346_v55 = vsub.f32 1.0, %v345_v50 }
  0xd4   :  { %v317_v53 = vadd.f32 %v316_v52, %v274_v49 }
  0xd5   :  { %v347_v58 = vmul.f32 %v457_v48, %v346_v55 }
  0xd6   :  { %v359_v56 = vadd.f32 %v317_v53, %v201_v51  ;;  %v336_v0 = vpop.f32.mrf.mxu1 }
  0xd7   :  { %v348_v60 = vadd.f32 %v457_v48, %v347_v58  ;;  %v337_v4 = vadd.f32 %v336_v0, %v275_v62 }
  0xd8   :  { %v442_v57 = vmul.f32 -1.442695, %v359_v56 }
  0xd9   :  { %v352_v3 = vsel %vm351_vm2, %v457_v48, %v348_v60 }
  0xda   :  { %458 = vpow2.f32 %v442_v57  ;;  %v357_v6 = vsel %vm354_vm3, %v356_v1, %v352_v3 }
  0xdb   :  { %v379_v8 = vmul.f32 %v357_v6, %v337_v4 }
  0xdd   :  { %v380_v12 = vadd.f32 %v379_v8, %v221_v9 }
  0xe0   :  { %v459_v63 = vpop.eup %458 }
  0xe1   :  { %v363_v2 = vadd.f32 1.0, %v459_v63 }
  0xe3   :  { %460 = vrcp.f32 %v363_v2  ;;  %v375_v14 = vand.u32 2147483648, %v363_v2  ;;  %v373_v16 = vand.u32 2147483647, %v363_v2  ;;  %vm369_vm5 = vweird.f32 %v363_v2 }
  0xe4   :  { %462 = vtanh.f32 %v380_v12 }
  0xe5   :  { %v376_v18 = vor.u32 1.1754944e-38, %v375_v14  ;;  %vm374_vm7 = vcmp.eq.f32.partialorder %v373_v16, 8.507059e+37 }
  0xe9   :  { %v461_v10 = vpop.eup %460 }
  0xea   :  { %v365_v11 = vmul.f32 %v461_v10, %v363_v2  ;;  %vm370_vm4 = vweird.f32 %v461_v10  ;;  %v463_v22 = vpop.eup %462 }
  0xeb   :  { %vm371_vm6 = vmor %vm369_vm5, %vm370_vm4 }
  0xec   :  { %v366_v13 = vsub.f32 1.0, %v365_v11 }
  0xee   :  { %v367_v15 = vmul.f32 %v461_v10, %v366_v13 }
  0xf0   :  { %v368_v17 = vadd.f32 %v461_v10, %v367_v15 }
  0xf2   :  { %v372_v19 = vsel %vm371_vm6, %v461_v10, %v368_v17 }
  0xf3   :  { %v377_v20 = vsel %vm374_vm7, %v376_v18, %v372_v19 }
  0xf4   :  { %v382_v21 = vsub.f32 1.0, %v377_v20  ;;  %v384_v24 = vmul.f32 %v377_v20, %v691_v54 }
  0xf6   :  { %v383_v23 = vmul.f32 %v463_v22, %v382_v21 }
  0xf8   :  { %v385_v25 = vadd.f32 %v384_v24, %v383_v23 }
  0xfa   :  { %386 = vadd.xlane.f32.xlu0 %v385_v25 }
 0x16d   :  { %v387_v27 = vpop.xlane.xlu0 %386 }
 0x16e   :  { %v388_v28 = vmul.f32 0.03125, %v387_v27 }
 0x170   :  { %v393_v29 = vmul.f32 %v451_v26, %v388_v28 }
 0x172   :  { %v394_v30 = vsub.f32 %v385_v25, %v393_v29 }
 0x174   :  { %v395_v31 = vmul.f32 %v394_v30, %v394_v30 }
 0x176   :  { %396 = vadd.xlane.f32.xlu0 %v395_v31 }
 0x1e9   :  { %v397_v32 = vpop.xlane.xlu0 %396 }
 0x1ea   :  { %v398_v33 = vmul.f32 0.03125, %v397_v32 }
 0x1ec   :  { %v399_v34 = vadd.f32 1e-05, %v398_v33 }
 0x1ee   :  { %464 = vrsqrt.f32 %v399_v34  ;;  %vm406_vm9 = vweird.f32 %v399_v34 }
 0x1f4   :  { %v465_v35 = vpop.eup %464 }
 0x1f5   :  { %v401_v36 = vmul.f32 %v465_v35, %v399_v34  ;;  %vm407_vm8 = vweird.f32 %v465_v35 }
 0x1f6   :  { %vm408_vm10 = vmor %vm406_vm9, %vm407_vm8 }
 0x1f7   :  { %v402_v37 = vmul.f32 %v465_v35, %v401_v36 }
 0x1f9   :  { %v403_v54 = vmul.f32 0.5, %v402_v37 }
 0x1fb   :  { %v404_v38 = vsub.f32 1.5, %v403_v54 }
 0x1fd   :  { %v405_v39 = vmul.f32 %v465_v35, %v404_v38 }
 0x1ff   :  { %v409_v41 = vsel %vm408_vm10, %v465_v35, %v405_v39 }
 0x200   :  { %v410_v42 = vmul.f32 %v409_v41, %v394_v30 }
 0x202   :  { %v415_v44 = vmul.f32 %v452_v40, %v410_v42 }
 0x204   :  { %v420_v45 = vadd.f32 %v453_v43, %v415_v44 }
 0x206   :  { %421 = vst [vmem:[#allocation11] sm:$0xff] %v420_v45 }
 0x207   :  { %432 = dma.vmem_to_hbm [thread:$0]  %s428_s17, 128, %s430_s20, [#allocation4]  }
 0x208   :  { %616 = dma.done.wait [#allocation4], 128  }
 0x209   :  { %617 = vsyncadd [#allocation4], 4294967168 }
 0x20a   :  { %437 = vsyncpa [#allocation3], 1 }
 0x20b   :  { %438 = vsyncpa [#allocation6], 1 }
 0x20c   :  { %439 = vsyncpa [#allocation9], 1 }
 0x20d   :  { %440 = vsyncpa [#allocation4], 1 }

// kernel: tpu_custom_call.1
= control target key start
LH: loop header
LB: loop body
LE: loop exit
PB: predicated region body
PF: predicated region fallthrough
CT: control target
= control target key end

     0   :  { %14 = vsyncpa [#allocation3], 0  ;;  %s717_s0 = inlined_call_operand.hbm [shape: f32[8,128], index: 0, kind: input, shape index: {}]   ;;  %s718_s1 = inlined_call_operand.hbm [shape: f32[8,128], index: 1, kind: input, shape index: {}]   ;;  %s719_s2 = inlined_call_operand.hbm [shape: f32[128,384], index: 2, kind: input, shape index: {}]   ;;  %s720_s3 = inlined_call_operand.hbm [shape: f32[128,384], index: 3, kind: input, shape index: {}]   ;;  %s721_s4 = inlined_call_operand.vmem [shape: f32[1,384], index: 4, kind: input, shape index: {}]   ;;  %s722_s5 = inlined_call_operand.hbm [shape: f32[1,384], index: 5, kind: input, shape index: {}]   ;;  %s723_s6 = inlined_call_operand.vmem [shape: f32[1,128], index: 6, kind: input, shape index: {}]   ;;  %s724_s7 = inlined_call_operand.vmem [shape: f32[1,128], index: 7, kind: input, shape index: {}]   ;;  %s725_s8 = inlined_call_operand.vmem [shape: f32[1,128], index: 8, kind: input, shape index: {}]   ;;  %s726_s9 = inlined_call_operand.hbm [shape: f32[8,128], index: 9, kind: output, shape index: {}]  }
   0x1   :  { %15 = vsyncpa [#allocation6], 0 }
   0x2   :  { %16 = vsyncpa [#allocation9], 0  ;;  %s34_s11 = sshll.u32 %s718_s1, 4  ;;  %s35_s11 = int_to_ptr.hbm [resolvable:$true] %s34_s11 }
   0x3   :  { %17 = vsyncpa [#allocation4], 0  ;;  %s618_s12 = smov [#allocation5]   ;;  %s57_s16 = sshll.u32 %s720_s3, 4  ;;  %s58_s16 = int_to_ptr.hbm [resolvable:$true] %s57_s16 }
   0x4   :  { %s36_s13 = sshll.u32 %s618_s12, 4  ;;  %s619_s17 = smov [#allocation8]   ;;  %s37_s13 = int_to_ptr.vmem [resolvable:$true] %s36_s13 }
   0x5   :  { %39 = dma.hbm_to_vmem [thread:$0]  %s35_s11, 128, %s37_s13, [#allocation6]  }
   0x6   :  { %s59_s18 = sshll.u32 %s619_s17, 4  ;;  %s23_s21 = sshll.u32 %s717_s0, 4  ;;  %s60_s18 = int_to_ptr.vmem [resolvable:$true] %s59_s18  ;;  %s24_s21 = int_to_ptr.hbm [resolvable:$true] %s23_s21 }
   0x7   :  { %s620_s1 = smov 384   ;;  %s621_s22 = smov 24  }
   0x8   :  { %65 = dma.hbm_to_vmem [thread:$0]  %s58_s16, 6144, %s60_s18, [#allocation9], %s620_s1, %s620_s1, %s621_s22  }
   0x9   :  { %s44_s25 = sshll.u32 %s719_s2, 4  ;;  %s622_s26 = smov [#allocation2]   ;;  %s45_s25 = int_to_ptr.hbm [resolvable:$true] %s44_s25 }
   0xa   :  { %s25_s27 = sshll.u32 %s622_s26, 4  ;;  %s623_s3 = smov [#allocation7]   ;;  %s26_s27 = int_to_ptr.vmem [resolvable:$true] %s25_s27 }
   0xb   :  { %28 = dma.hbm_to_vmem [thread:$0]  %s24_s21, 128, %s26_s27, [#allocation3]  }
   0xc   :  { %s46_s28 = sshll.u32 %s623_s3, 4  ;;  %s73_s0 = sshll.u32 %s722_s5, 4  ;;  %s47_s28 = int_to_ptr.vmem [resolvable:$true] %s46_s28  ;;  %s74_s0 = int_to_ptr.hbm [resolvable:$true] %s73_s0 }
   0xd   :  { %52 = dma.hbm_to_vmem [thread:$0]  %s45_s25, 6144, %s47_s28, [#allocation6], %s620_s1, %s620_s1, %s621_s22  }
   0xe   :  { %s624_s10 = smov [#allocation10]  }
   0xf   :  { %s75_s11 = sshll.u32 %s624_s10, 4  ;;  %s76_s11 = int_to_ptr.vmem [resolvable:$true] %s75_s11 }
  0x10   :  { %78 = dma.hbm_to_vmem [thread:$0]  %s74_s0, 48, %s76_s11, [#allocation9]  }
  0x11   :  { %610 = dma.done.wait [#allocation3], 128  }
  0x12   :  { %611 = vsyncadd [#allocation3], 4294967168 }
  0x13   :  { %612 = dma.done.wait [#allocation6], 6272  }
  0x14   :  { %613 = vsyncadd [#allocation6], 4294961024 }
  0x15   :  { %614 = dma.done.wait [#allocation9], 6192  }
  0x16   :  { %615 = vsyncadd [#allocation9], 4294961104  ;;  %v152_v0 = vld [vmem:[#allocation7 + $0x168] sm:$0xff]  ;;  %v149_v1 = vld [vmem:[#allocation7 + $0x150] sm:$0xff]  ;;  %s625_s16 = smov [#allocation11]   ;;  %s429_s20 = sshll.u32 %s726_s9, 4  ;;  %s430_s20 = int_to_ptr.hbm [resolvable:$true] %s429_s20 }
  0x17   :  { %v268_v2 = vld [vmem:[#allocation8 + $0x168] sm:$0xff]  ;;  %163 = vmatpush.msra.mxu0 %v152_v0  ;;  %v265_v3 = vld [vmem:[#allocation8 + $0x150] sm:$0xff]  ;;  %v146_v4 = vld [vmem:[#allocation7 + $0x138] sm:$0xff]  ;;  %s427_s17 = sshll.u32 %s625_s16, 4  ;;  %s428_s17 = int_to_ptr.vmem [resolvable:$true] %s427_s17 }
  0x18   :  { %279 = vmatpush.msra.mxu3 %v268_v2  ;;  %v262_v5 = vld [vmem:[#allocation8 + $0x138] sm:$0xff]  ;;  %v153_v6 = vld [vmem:[#allocation7 + $0x170] sm:$0xff]  ;;  %v143_v8 = vld [vmem:[#allocation7 + $0x120] sm:$0xff] }
  0x19   :  { %164 = vmatpush.msra.mxu0 %v149_v1  ;;  %v150_v7 = vld [vmem:[#allocation7 + $0x158] sm:$0xff]  ;;  %183 = vmatpush.msra.mxu1 %v153_v6  ;;  %v259_v9 = vld [vmem:[#allocation8 + $0x120] sm:$0xff]  ;;  %v140_v11 = vld [vmem:[#allocation7 + $0x108] sm:$0xff] }
  0x1a   :  { %280 = vmatpush.msra.mxu3 %v265_v3  ;;  %v147_v10 = vld [vmem:[#allocation7 + $0x140] sm:$0xff]  ;;  %v256_v12 = vld [vmem:[#allocation8 + $0x108] sm:$0xff]  ;;  %v137_v14 = vld [vmem:[#allocation7 + $0xf0] sm:$0xff] }
  0x1b   :  { %165 = vmatpush.msra.mxu0 %v146_v4  ;;  %184 = vmatpush.msra.mxu1 %v150_v7  ;;  %v144_v13 = vld [vmem:[#allocation7 + $0x128] sm:$0xff]  ;;  %v253_v15 = vld [vmem:[#allocation8 + $0xf0] sm:$0xff]  ;;  %v134_v17 = vld [vmem:[#allocation7 + $0xd8] sm:$0xff] }
  0x1c   :  { %281 = vmatpush.msra.mxu3 %v262_v5  ;;  %v141_v16 = vld [vmem:[#allocation7 + $0x110] sm:$0xff]  ;;  %v250_v18 = vld [vmem:[#allocation8 + $0xd8] sm:$0xff]  ;;  %v131_v20 = vld [vmem:[#allocation7 + $0xc0] sm:$0xff] }
  0x1d   :  { %166 = vmatpush.msra.mxu0 %v143_v8  ;;  %185 = vmatpush.msra.mxu1 %v147_v10  ;;  %v138_v19 = vld [vmem:[#allocation7 + $0xf8] sm:$0xff]  ;;  %v247_v21 = vld [vmem:[#allocation8 + $0xc0] sm:$0xff]  ;;  %v128_v23 = vld [vmem:[#allocation7 + $0xa8] sm:$0xff] }
  0x1e   :  { %282 = vmatpush.msra.mxu3 %v259_v9  ;;  %v135_v22 = vld [vmem:[#allocation7 + $0xe0] sm:$0xff]  ;;  %v244_v24 = vld [vmem:[#allocation8 + $0xa8] sm:$0xff]  ;;  %v125_v26 = vld [vmem:[#allocation7 + $0x90] sm:$0xff] }
  0x1f   :  { %167 = vmatpush.msra.mxu0 %v140_v11  ;;  %186 = vmatpush.msra.mxu1 %v144_v13  ;;  %v132_v25 = vld [vmem:[#allocation7 + $0xc8] sm:$0xff]  ;;  %v241_v27 = vld [vmem:[#allocation8 + $0x90] sm:$0xff]  ;;  %v154_v28 = vld [vmem:[#allocation7 + $0x178] sm:$0xff] }
  0x20   :  { %283 = vmatpush.msra.mxu3 %v256_v12  ;;  %v129_v29 = vld [vmem:[#allocation7 + $0xb0] sm:$0xff]  ;;  %v151_v30 = vld [vmem:[#allocation7 + $0x160] sm:$0xff]  ;;  %v122_v31 = vld [vmem:[#allocation7 + $0x78] sm:$0xff]  ;;  %203 = vmatpush.msra.mxu2 %v154_v28 }
  0x21   :  { %168 = vmatpush.msra.mxu0 %v137_v14  ;;  %187 = vmatpush.msra.mxu1 %v141_v16  ;;  %v238_v32 = vld [vmem:[#allocation8 + $0x78] sm:$0xff]  ;;  %v148_v34 = vld [vmem:[#allocation7 + $0x148] sm:$0xff]  ;;  %v119_v35 = vld [vmem:[#allocation7 + $0x60] sm:$0xff] }
  0x22   :  { %284 = vmatpush.msra.mxu3 %v253_v15  ;;  %v126_v33 = vld [vmem:[#allocation7 + $0x98] sm:$0xff]  ;;  %v235_v36 = vld [vmem:[#allocation8 + $0x60] sm:$0xff]  ;;  %204 = vmatpush.msra.mxu2 %v151_v30  ;;  %v145_v38 = vld [vmem:[#allocation7 + $0x130] sm:$0xff] }
  0x23   :  { %169 = vmatpush.msra.mxu0 %v134_v17  ;;  %188 = vmatpush.msra.mxu1 %v138_v19  ;;  %v123_v37 = vld [vmem:[#allocation7 + $0x80] sm:$0xff]  ;;  %v116_v39 = vld [vmem:[#allocation7 + $0x48] sm:$0xff]  ;;  %v142_v42 = vld [vmem:[#allocation7 + $0x118] sm:$0xff] }
  0x24   :  { %285 = vmatpush.msra.mxu3 %v250_v18  ;;  %v232_v40 = vld [vmem:[#allocation8 + $0x48] sm:$0xff]  ;;  %205 = vmatpush.msra.mxu2 %v148_v34  ;;  %v113_v43 = vld [vmem:[#allocation7 + $0x30] sm:$0xff]  ;;  %v139_v46 = vld [vmem:[#allocation7 + $0x100] sm:$0xff] }
  0x25   :  { %170 = vmatpush.msra.mxu0 %v131_v20  ;;  %189 = vmatpush.msra.mxu1 %v135_v22  ;;  %v120_v41 = vld [vmem:[#allocation7 + $0x68] sm:$0xff]  ;;  %v229_v44 = vld [vmem:[#allocation8 + $0x30] sm:$0xff]  ;;  %v110_v47 = vld [vmem:[#allocation7 + $0x18] sm:$0xff] }
  0x26   :  { %286 = vmatpush.msra.mxu3 %v247_v21  ;;  %206 = vmatpush.msra.mxu2 %v145_v38  ;;  %v117_v45 = vld [vmem:[#allocation7 + $0x50] sm:$0xff]  ;;  %v226_v48 = vld [vmem:[#allocation8 + $0x18] sm:$0xff]  ;;  %v136_v50 = vld [vmem:[#allocation7 + $0xe8] sm:$0xff] }
  0x27   :  { %171 = vmatpush.msra.mxu0 %v128_v23  ;;  %190 = vmatpush.msra.mxu1 %v132_v25  ;;  %v114_v49 = vld [vmem:[#allocation7 + $0x38] sm:$0xff]  ;;  %v107_v51 = vld [vmem:[#allocation7] sm:$0xff]  ;;  %v269_v53 = vld [vmem:[#allocation8 + $0x170] sm:$0xff] }
  0x28   :  { %287 = vmatpush.msra.mxu3 %v244_v24  ;;  %207 = vmatpush.msra.mxu2 %v142_v42  ;;  %v223_v52 = vld [vmem:[#allocation8] sm:$0xff]  ;;  %v691_v54 = vld [vmem:[#allocation5] sm:$0xff]  ;;  %v693_v56 = vld [vmem:[#allocation2] sm:$0xff] }
  0x29   :  { %172 = vmatpush.msra.mxu0 %v125_v26  ;;  %191 = vmatpush.msra.mxu1 %v129_v29  ;;  %v111_v55 = vld [vmem:[#allocation7 + $0x20] sm:$0xff]  ;;  %v266_v57 = vld [vmem:[#allocation8 + $0x158] sm:$0xff]  ;;  %v133_v58 = vld [vmem:[#allocation7 + $0xd0] sm:$0xff] }
  0x2a   :  { %288 = vmatpush.msra.mxu3 %v241_v27  ;;  %208 = vmatpush.msra.mxu2 %v139_v46  ;;  %v263_v59 = vld [vmem:[#allocation8 + $0x140] sm:$0xff]  ;;  %v108_v60 = vld [vmem:[#allocation7 + $0x8] sm:$0xff]  ;;  %v270_v61 = vld [vmem:[#allocation8 + $0x178] sm:$0xff] }
  0x2b   :  { %173 = vmatpush.msra.mxu0 %v122_v31  ;;  %192 = vmatpush.msra.mxu1 %v126_v33  ;;  %v130_v62 = vld [vmem:[#allocation7 + $0xb8] sm:$0xff]  ;;  %v260_v63 = vld [vmem:[#allocation8 + $0x128] sm:$0xff]  ;;  %v267_v0 = vld [vmem:[#allocation8 + $0x160] sm:$0xff] }
  0x2c   :  { %289 = vmatpush.msra.mxu3 %v238_v32  ;;  %209 = vmatpush.msra.mxu2 %v136_v50  ;;  %v127_v1 = vld [vmem:[#allocation7 + $0xa0] sm:$0xff]  ;;  %v257_v2 = vld [vmem:[#allocation8 + $0x110] sm:$0xff]  ;;  %v264_v3 = vld [vmem:[#allocation8 + $0x148] sm:$0xff] }
  0x2d   :  { %174 = vmatpush.msra.mxu0 %v119_v35  ;;  %193 = vmatpush.msra.mxu1 %v123_v37  ;;  %v124_v4 = vld [vmem:[#allocation7 + $0x88] sm:$0xff]  ;;  %v254_v5 = vld [vmem:[#allocation8 + $0xf8] sm:$0xff]  ;;  %v261_v6 = vld [vmem:[#allocation8 + $0x130] sm:$0xff] }
  0x2e   :  { %290 = vmatpush.msra.mxu3 %v235_v36  ;;  %210 = vmatpush.msra.mxu2 %v133_v58  ;;  %v121_v7 = vld [vmem:[#allocation7 + $0x70] sm:$0xff]  ;;  %v251_v8 = vld [vmem:[#allocation8 + $0xe0] sm:$0xff]  ;;  %v258_v9 = vld [vmem:[#allocation8 + $0x118] sm:$0xff] }
  0x2f   :  { %175 = vmatpush.msra.mxu0 %v116_v39  ;;  %194 = vmatpush.msra.mxu1 %v120_v41  ;;  %v118_v10 = vld [vmem:[#allocation7 + $0x58] sm:$0xff]  ;;  %v248_v11 = vld [vmem:[#allocation8 + $0xc8] sm:$0xff]  ;;  %v255_v12 = vld [vmem:[#allocation8 + $0x100] sm:$0xff] }
  0x30   :  { %291 = vmatpush.msra.mxu3 %v232_v40  ;;  %211 = vmatpush.msra.mxu2 %v130_v62  ;;  %v115_v13 = vld [vmem:[#allocation7 + $0x40] sm:$0xff]  ;;  %v245_v14 = vld [vmem:[#allocation8 + $0xb0] sm:$0xff]  ;;  %v252_v15 = vld [vmem:[#allocation8 + $0xe8] sm:$0xff] }
  0x31   :  { %176 = vmatpush.msra.mxu0 %v113_v43  ;;  %195 = vmatpush.msra.mxu1 %v117_v45  ;;  %v112_v16 = vld [vmem:[#allocation7 + $0x28] sm:$0xff]  ;;  %v242_v17 = vld [vmem:[#allocation8 + $0x98] sm:$0xff]  ;;  %v249_v18 = vld [vmem:[#allocation8 + $0xd0] sm:$0xff] }
  0x32   :  { %292 = vmatpush.msra.mxu3 %v229_v44  ;;  %212 = vmatpush.msra.mxu2 %v127_v1  ;;  %v109_v19 = vld [vmem:[#allocation7 + $0x10] sm:$0xff]  ;;  %v239_v20 = vld [vmem:[#allocation8 + $0x80] sm:$0xff]  ;;  %v246_v21 = vld [vmem:[#allocation8 + $0xb8] sm:$0xff] }
  0x33   :  { %177 = vmatpush.msra.mxu0 %v110_v47  ;;  %196 = vmatpush.msra.mxu1 %v114_v49  ;;  %v236_v22 = vld [vmem:[#allocation8 + $0x68] sm:$0xff]  ;;  %v243_v23 = vld [vmem:[#allocation8 + $0xa0] sm:$0xff]  ;;  %v233_v24 = vld [vmem:[#allocation8 + $0x50] sm:$0xff] }
  0x34   :  { %293 = vmatpush.msra.mxu3 %v226_v48  ;;  %213 = vmatpush.msra.mxu2 %v124_v4  ;;  %v240_v25 = vld [vmem:[#allocation8 + $0x88] sm:$0xff]  ;;  %v230_v26 = vld [vmem:[#allocation8 + $0x38] sm:$0xff]  ;;  %v237_v27 = vld [vmem:[#allocation8 + $0x70] sm:$0xff] }
  0x35   :  { %178 = vmatpush.msra.mxu0 %v107_v51  ;;  %197 = vmatpush.msra.mxu1 %v111_v55  ;;  %v227_v28 = vld [vmem:[#allocation8 + $0x20] sm:$0xff]  ;;  %v234_v29 = vld [vmem:[#allocation8 + $0x58] sm:$0xff]  ;;  %v224_v30 = vld [vmem:[#allocation8 + $0x8] sm:$0xff] }
  0x36   :  { %294 = vmatpush.msra.mxu3 %v223_v52  ;;  %179 = vmatmul.f32.vlgmr.msra.gmra.mxu0 %v693_v56  ;;  %v231_v31 = vld [vmem:[#allocation8 + $0x40] sm:$0xff]  ;;  %v228_v32 = vld [vmem:[#allocation8 + $0x28] sm:$0xff]  ;;  %v225_v33 = vld [vmem:[#allocation8 + $0x10] sm:$0xff] }
  0x37   :  { %299 = vmatpush.msrb.mxu0 %v269_v53  ;;  %295 = vmatmul.f32.vlgmr.msra.gmra.mxu3 %v691_v54  ;;  %v155_v34 = vld [vmem:[%s721_s4] sm:$0x7]  ;;  %v271_v35 = vld [vmem:[#allocation10] sm:$0x7] }
  0x38   :  { %198 = vmatpush.msra.mxu1 %v108_v60  ;;  %214 = vmatpush.msra.mxu2 %v121_v7  ;;  %v157_v36 = vperm.slane %v155_v34, 0  ;;  %v273_v38 = vperm.slane %v271_v35, 0  ;;  %v158_v46 = vperm.slane %v155_v34, 1  ;;  %v274_v49 = vperm.slane %v271_v35, 1 }
  0x39   :  { %300 = vmatpush.msrb.mxu0 %v266_v57  ;;  %199 = vmatmul.f32.vlgmr.msra.gmra.mxu1 %v693_v56  ;;  %v275_v62 = vperm.slane %v271_v35, 2 }
  0x3a   :  { %319 = vmatpush.msrb.mxu1 %v270_v61  ;;  %215 = vmatpush.msra.mxu2 %v118_v10 }
  0x3b   :  { %301 = vmatpush.msrb.mxu0 %v263_v59 }
  0x3c   :  { %320 = vmatpush.msrb.mxu1 %v267_v0  ;;  %216 = vmatpush.msra.mxu2 %v115_v13 }
  0x3d   :  { %302 = vmatpush.msrb.mxu0 %v260_v63 }
  0x3e   :  { %321 = vmatpush.msrb.mxu1 %v264_v3  ;;  %217 = vmatpush.msra.mxu2 %v112_v16 }
  0x3f   :  { %303 = vmatpush.msrb.mxu0 %v257_v2 }
  0x40   :  { %322 = vmatpush.msrb.mxu1 %v261_v6  ;;  %218 = vmatpush.msra.mxu2 %v109_v19 }
  0x41   :  { %304 = vmatpush.msrb.mxu0 %v254_v5  ;;  %219 = vmatmul.f32.vlgmr.msra.gmra.mxu2 %v693_v56  ;;  %v159_v5 = vperm.slane %v155_v34, 2 }
  0x42   :  { %323 = vmatpush.msrb.mxu1 %v258_v9 }
  0x43   :  { %305 = vmatpush.msrb.mxu0 %v251_v8 }
  0x44   :  { %324 = vmatpush.msrb.mxu1 %v255_v12 }
  0x45   :  { %306 = vmatpush.msrb.mxu0 %v248_v11 }
  0x46   :  { %325 = vmatpush.msrb.mxu1 %v252_v15 }
  0x47   :  { %307 = vmatpush.msrb.mxu0 %v245_v14 }
  0x48   :  { %326 = vmatpush.msrb.mxu1 %v249_v18 }
  0x49   :  { %308 = vmatpush.msrb.mxu0 %v242_v17 }
  0x4a   :  { %327 = vmatpush.msrb.mxu1 %v246_v21 }
  0x4b   :  { %309 = vmatpush.msrb.mxu0 %v239_v20 }
  0x4c   :  { %328 = vmatpush.msrb.mxu1 %v243_v23 }
  0x4d   :  { %310 = vmatpush.msrb.mxu0 %v236_v22 }
  0x4e   :  { %329 = vmatpush.msrb.mxu1 %v240_v25 }
  0x4f   :  { %311 = vmatpush.msrb.mxu0 %v233_v24 }
  0x50   :  { %330 = vmatpush.msrb.mxu1 %v237_v27 }
  0x51   :  { %312 = vmatpush.msrb.mxu0 %v230_v26  ;;  %v451_v26 = vld [vmem:[%s725_s8] ss:$0 sm:$0xff] }
  0x52   :  { %331 = vmatpush.msrb.mxu1 %v234_v29 }
  0x53   :  { %313 = vmatpush.msrb.mxu0 %v227_v28 }
  0x54   :  { %332 = vmatpush.msrb.mxu1 %v231_v31 }
  0x55   :  { %314 = vmatpush.msrb.mxu0 %v224_v30 }
  0x56   :  { %315 = vmatmul.f32.vlgmr.msrb.gmra.mxu0 %v691_v54  ;;  %333 = vmatpush.msrb.mxu1 %v228_v32 }
  0x58   :  { %334 = vmatpush.msrb.mxu1 %v225_v33 }
  0x59   :  { %335 = vmatmul.f32.vlgmr.msrb.gmra.mxu1 %v691_v54 }
  0xb3   :  { %v180_v37 = vpop.f32.mrf.mxu0 }
  0xb4   :  { %v181_v39 = vadd.f32 %v180_v37, %v157_v36 }
  0xb6   :  { %v200_v47 = vpop.f32.mrf.mxu1 }
  0xb7   :  { %v201_v51 = vadd.f32 %v200_v47, %v158_v46 }
  0xba   :  { %v296_v40 = vpop.f32.mrf.mxu3 }
  0xbb   :  { %v297_v41 = vadd.f32 %v296_v40, %v273_v38  ;;  %v452_v40 = vld [vmem:[%s723_s6] ss:$0 sm:$0xff] }
  0xbd   :  { %v339_v42 = vadd.f32 %v297_v41, %v181_v39 }
  0xbf   :  { %v441_v43 = vmul.f32 -1.442695, %v339_v42 }
  0xc1   :  { %454 = vpow2.f32 %v441_v43  ;;  %v453_v43 = vld [vmem:[%s724_s7] ss:$0 sm:$0xff] }
  0xc4   :  { %v220_v7 = vpop.f32.mrf.mxu2 }
  0xc5   :  { %v221_v9 = vadd.f32 %v220_v7, %v159_v5 }
  0xc7   :  { %v455_v44 = vpop.eup %454 }
  0xc8   :  { %v343_v45 = vadd.f32 1.0, %v455_v44 }
  0xca   :  { %456 = vrcp.f32 %v343_v45  ;;  %vm349_vm0 = vweird.f32 %v343_v45  ;;  %v355_v59 = vand.u32 2147483648, %v343_v45  ;;  %v353_v61 = vand.u32 2147483647, %v343_v45 }
  0xcc   :  { %v356_v1 = vor.u32 1.1754944e-38, %v355_v59  ;;  %vm354_vm3 = vcmp.eq.f32.partialorder %v353_v61, 8.507059e+37 }
  0xd0   :  { %v457_v48 = vpop.eup %456 }
  0xd1   :  { %v345_v50 = vmul.f32 %v457_v48, %v343_v45  ;;  %vm350_vm1 = vweird.f32 %v457_v48 }
  0xd2   :  { %vm351_vm2 = vmor %vm349_vm0, %vm350_vm1 }
  0xd3   :  { %v316_v52 = vpop.f32.mrf.mxu0  ;;  %v346_v55 = vsub.f32 1.0, %v345_v50 }
  0xd4   :  { %v317_v53 = vadd.f32 %v316_v52, %v274_v49 }
  0xd5   :  { %v347_v58 = vmul.f32 %v457_v48, %v346_v55 }
  0xd6   :  { %v359_v56 = vadd.f32 %v317_v53, %v201_v51  ;;  %v336_v0 = vpop.f32.mrf.mxu1 }
  0xd7   :  { %v348_v60 = vadd.f32 %v457_v48, %v347_v58  ;;  %v337_v4 = vadd.f32 %v336_v0, %v275_v62 }
  0xd8   :  { %v442_v57 = vmul.f32 -1.442695, %v359_v56 }
  0xd9   :  { %v352_v3 = vsel %vm351_vm2, %v457_v48, %v348_v60 }
  0xda   :  { %458 = vpow2.f32 %v442_v57  ;;  %v357_v6 = vsel %vm354_vm3, %v356_v1, %v352_v3 }
  0xdb   :  { %v379_v8 = vmul.f32 %v357_v6, %v337_v4 }
  0xdd   :  { %v380_v12 = vadd.f32 %v379_v8, %v221_v9 }
  0xe0   :  { %v459_v63 = vpop.eup %458 }
  0xe1   :  { %v363_v2 = vadd.f32 1.0, %v459_v63 }
  0xe3   :  { %460 = vrcp.f32 %v363_v2  ;;  %v375_v14 = vand.u32 2147483648, %v363_v2  ;;  %v373_v16 = vand.u32 2147483647, %v363_v2  ;;  %vm369_vm5 = vweird.f32 %v363_v2 }
  0xe4   :  { %462 = vtanh.f32 %v380_v12 }
  0xe5   :  { %v376_v18 = vor.u32 1.1754944e-38, %v375_v14  ;;  %vm374_vm7 = vcmp.eq.f32.partialorder %v373_v16, 8.507059e+37 }
  0xe9   :  { %v461_v10 = vpop.eup %460 }
  0xea   :  { %v365_v11 = vmul.f32 %v461_v10, %v363_v2  ;;  %vm370_vm4 = vweird.f32 %v461_v10  ;;  %v463_v22 = vpop.eup %462 }
  0xeb   :  { %vm371_vm6 = vmor %vm369_vm5, %vm370_vm4 }
  0xec   :  { %v366_v13 = vsub.f32 1.0, %v365_v11 }
  0xee   :  { %v367_v15 = vmul.f32 %v461_v10, %v366_v13 }
  0xf0   :  { %v368_v17 = vadd.f32 %v461_v10, %v367_v15 }
  0xf2   :  { %v372_v19 = vsel %vm371_vm6, %v461_v10, %v368_v17 }
  0xf3   :  { %v377_v20 = vsel %vm374_vm7, %v376_v18, %v372_v19 }
  0xf4   :  { %v382_v21 = vsub.f32 1.0, %v377_v20  ;;  %v384_v24 = vmul.f32 %v377_v20, %v691_v54 }
  0xf6   :  { %v383_v23 = vmul.f32 %v463_v22, %v382_v21 }
  0xf8   :  { %v385_v25 = vadd.f32 %v384_v24, %v383_v23 }
  0xfa   :  { %386 = vadd.xlane.f32.xlu0 %v385_v25 }
 0x16d   :  { %v387_v27 = vpop.xlane.xlu0 %386 }
 0x16e   :  { %v388_v28 = vmul.f32 0.03125, %v387_v27 }
 0x170   :  { %v393_v29 = vmul.f32 %v451_v26, %v388_v28 }
 0x172   :  { %v394_v30 = vsub.f32 %v385_v25, %v393_v29 }
 0x174   :  { %v395_v31 = vmul.f32 %v394_v30, %v394_v30 }
 0x176   :  { %396 = vadd.xlane.f32.xlu0 %v395_v31 }
 0x1e9   :  { %v397_v32 = vpop.xlane.xlu0 %396 }
 0x1ea   :  { %v398_v33 = vmul.f32 0.03125, %v397_v32 }
 0x1ec   :  { %v399_v34 = vadd.f32 1e-05, %v398_v33 }
 0x1ee   :  { %464 = vrsqrt.f32 %v399_v34  ;;  %vm406_vm9 = vweird.f32 %v399_v34 }
 0x1f4   :  { %v465_v35 = vpop.eup %464 }
 0x1f5   :  { %v401_v36 = vmul.f32 %v465_v35, %v399_v34  ;;  %vm407_vm8 = vweird.f32 %v465_v35 }
 0x1f6   :  { %vm408_vm10 = vmor %vm406_vm9, %vm407_vm8 }
 0x1f7   :  { %v402_v37 = vmul.f32 %v465_v35, %v401_v36 }
 0x1f9   :  { %v403_v54 = vmul.f32 0.5, %v402_v37 }
 0x1fb   :  { %v404_v38 = vsub.f32 1.5, %v403_v54 }
 0x1fd   :  { %v405_v39 = vmul.f32 %v465_v35, %v404_v38 }
 0x1ff   :  { %v409_v41 = vsel %vm408_vm10, %v465_v35, %v405_v39 }
 0x200   :  { %v410_v42 = vmul.f32 %v409_v41, %v394_v30 }
 0x202   :  { %v415_v44 = vmul.f32 %v452_v40, %v410_v42 }
 0x204   :  { %v420_v45 = vadd.f32 %v453_v43, %v415_v44 }
 0x206   :  { %421 = vst [vmem:[#allocation11] sm:$0xff] %v420_v45 }
 0x207   :  { %432 = dma.vmem_to_hbm [thread:$0]  %s428_s17, 128, %s430_s20, [#allocation4]  }
 0x208   :  { %616 = dma.done.wait [#allocation4], 128  }
 0x209   :  { %617 = vsyncadd [#allocation4], 4294967168 }
 0x20a   :  { %437 = vsyncpa [#allocation3], 1 }
 0x20b   :  { %438 = vsyncpa [#allocation6], 1 }
 0x20c   :  { %439 = vsyncpa [#allocation9], 1 }
 0x20d   :  { %440 = vsyncpa [#allocation4], 1 }

</bundles_post_ra>
